<compile_context>
chip_gen: v6e
topology: v6e:2x2x1
jax: 0.10.0
libtpu: 0.0.40
codegen_flags: <defaults>
</compile_context>

<pallas_src>
import jax
import jax.numpy as jnp
from jax.experimental import pallas as pl
from jax.experimental.pallas import tpu as pltpu


def fasttext_kernel(ids_ref, emb_ref, w_ref, b_ref, o_ref):
    # ids_ref: VMEM [TB, S]         int32  token ids for this batch tile
    # emb_ref: VMEM [V_pad, D_pad]  bf16   embedding table (resident; pad rows/cols zero)
    # w_ref  : VMEM [D_pad, O_pad]  bf16   fc.weight.T / seq_len (resident)
    # b_ref  : VMEM [1, O_pad]      f32    fc.bias (resident)
    # o_ref  : VMEM [TB, O_pad]     f32    output tile
    tb, seq_len = ids_ref.shape
    v_pad = emb_ref.shape[0]

    ids = ids_ref[...]                                               # [TB, S] int32
    v_iota = jax.lax.broadcasted_iota(jnp.int32, (tb, v_pad), 1)     # lane index

    # Token-count matrix: counts[b, v] = #{s : ids[b, s] == v}.
    # seq_len is a small static Python int -> unrolled lane-broadcast compares + adds
    # on the VPU; working set stays at one [TB, V_pad] f32 accumulator.
    counts = jnp.zeros((tb, v_pad), jnp.float32)
    for s in range(seq_len):
        counts = counts + (ids[:, s:s + 1] == v_iota).astype(jnp.float32)

    # Gather + sum over the sequence as one MXU matmul:
    #   sum_s emb[ids[b, s], :] == counts[b, :] @ table   (bf16 x bf16, f32 accumulate)
    pooled = jnp.dot(counts.astype(jnp.bfloat16), emb_ref[...],
                     preferred_element_type=jnp.float32)             # [TB, D_pad] f32

    # Classifier: 1/seq_len already folded into w_ref, so the epilogue is just + bias.
    out = jnp.dot(pooled.astype(jnp.bfloat16), w_ref[...],
                  preferred_element_type=jnp.float32)                # [TB, O_pad] f32
    o_ref[...] = out + b_ref[...]


def fasttext_forward(text, emb_table, fc_w, fc_b, *, pad_idx=None, batch_tile=128):
    """FastText forward pass.

    text:      int32 [seq_len, batch]  (seq-major, PyTorch convention)
    emb_table: f32   [vocab, D]        (padding_idx row zeroed)
    fc_w:      f32   [output_dim, D]   (PyTorch Linear weight)
    fc_b:      f32   [output_dim]
    returns:   f32   [batch, output_dim]
    """
    S, B = text.shape
    V, D = emb_table.shape
    O = fc_w.shape[0]

    v_pad = pl.cdiv(V, 128) * 128          # lane-dense counts / sublane-aligned table
    d_pad = pl.cdiv(D, 128) * 128          # lane-dense table rows / matmul K dim
    o_pad = pl.cdiv(O, 128) * 128          # lane-dense output (unmasked vst)

    # VMEM-resident-table path only (see TODO at top for the large-vocab HBM path).
    assert v_pad * d_pad * 2 <= (8 << 20), "embedding table too large for VMEM-resident path"

    batch_tile = max(8, min(batch_tile, pl.cdiv(B, 8) * 8))
    b_pad = pl.cdiv(B, batch_tile) * batch_tile

    fill = pad_idx if pad_idx is not None else 0
    ids = text.T.astype(jnp.int32)                                   # [B, S] batch-major
    if b_pad != B:
        # Pad with pad_idx tokens: their embedding row is zero, so padded batch rows
        # produce exactly `bias` and are sliced off below.
        ids = jnp.pad(ids, ((0, b_pad - B), (0, 0)), constant_values=fill)

    # One-time host-side parameter transforms (constants): bf16 table, bf16 weights
    # with the 1/seq_len mean scale folded in, f32 bias; all zero-padded to 128 lanes.
    emb_p = jnp.zeros((v_pad, d_pad), jnp.bfloat16).at[:V, :D].set(
        emb_table.astype(jnp.bfloat16))
    w_p = jnp.zeros((d_pad, o_pad), jnp.bfloat16).at[:D, :O].set(
        (fc_w.T / S).astype(jnp.bfloat16))
    b_p = jnp.zeros((1, o_pad), jnp.float32).at[:, :O].set(fc_b.astype(jnp.float32))

    grid = (b_pad // batch_tile,)

    out = pl.pallas_call(
        fasttext_kernel,
        out_shape=jax.ShapeDtypeStruct((b_pad, o_pad), jnp.float32),
        grid_spec=pltpu.PrefetchScalarGridSpec(
            num_scalar_prefetch=0,
            grid=grid,
            in_specs=[
                pl.BlockSpec((batch_tile, S), lambda i: (i, 0)),     # token-id tile
                pl.BlockSpec((v_pad, d_pad), lambda i: (0, 0)),      # resident table
                pl.BlockSpec((d_pad, o_pad), lambda i: (0, 0)),      # resident weights
                pl.BlockSpec((1, o_pad), lambda i: (0, 0)),          # resident bias
            ],
            out_specs=pl.BlockSpec((batch_tile, o_pad), lambda i: (i, 0)),
        ),
        compiler_params=pltpu.CompilerParams(
            dimension_semantics=("parallel",),   # megacore-shards batch tiles on v7x
            vmem_limit_bytes=32 << 20,           # tiny footprint; fits every generation
        ),
    )(ids, emb_p, w_p, b_p)

    return out[:B, :O]


if __name__ == "__main__":
    vocab_size = 50
    embedding_dim = 32
    output_dim = 8
    pad_idx = 1
    seq_len = 8
    batch = 256          # two batch tiles of 128 -> exercises the parallel grid

    key = jax.random.PRNGKey(0)
    k_emb, k_w, k_b, k_txt = jax.random.split(key, 4)

    # Deterministic parameter init (nn.Embedding ~ N(0,1); padding row zeroed).
    emb_table = jax.random.normal(k_emb, (vocab_size, embedding_dim), jnp.float32)
    emb_table = emb_table.at[pad_idx].set(0.0)
    fc_w = jax.random.normal(k_w, (output_dim, embedding_dim), jnp.float32) * 0.1
    fc_b = jax.random.normal(k_b, (output_dim,), jnp.float32) * 0.1

    # Input tokens: [seq_len, batch] int32 (seq-major, as the permute implies).
    text = jax.random.randint(k_txt, (seq_len, batch), 0, vocab_size, jnp.int32)

    out = fasttext_forward(text, emb_table, fc_w, fc_b, pad_idx=pad_idx)
    out = jax.block_until_ready(out)
    assert out.shape == (batch, output_dim)

    # Tight reference matching the kernel's precision choices (bf16 table, bf16
    # pooled/weights with 1/S folded into the weights, f32 accumulation).
    table_bf = emb_table.astype(jnp.bfloat16).astype(jnp.float32)
    pooled_sum = jnp.sum(jnp.take(table_bf, text, axis=0), axis=0)            # [B, D]
    pooled_bf = pooled_sum.astype(jnp.bfloat16).astype(jnp.float32)
    w_scaled = (fc_w.T / seq_len).astype(jnp.bfloat16).astype(jnp.float32)
    ref_tight = pooled_bf @ w_scaled + fc_b
    assert jnp.allclose(out, ref_tight, atol=2e-3, rtol=2e-3), "mismatch vs bf16-matched reference"

    # Loose sanity check against the full-f32 PyTorch-equivalent forward.
    ref_f32 = jnp.mean(jnp.take(emb_table, text, axis=0), axis=0) @ fc_w.T + fc_b
    assert jnp.allclose(out, ref_f32, atol=5e-2, rtol=5e-2), "mismatch vs f32 reference"

    print("KERNEL_OK")
</pallas_src>

<mosaic_0001>
module attributes {stable_mosaic.version = 11 : i64} {
  func.func @fasttext_kernel(%arg0: i32, %arg1: memref<128x8xi32, #tpu.memory_space<vmem>>, %arg2: memref<128x128xbf16, #tpu.memory_space<vmem>>, %arg3: memref<128x128xbf16, #tpu.memory_space<vmem>>, %arg4: memref<1x128xf32, #tpu.memory_space<vmem>>, %arg5: memref<128x128xf32, #tpu.memory_space<vmem>>) attributes {dimension_semantics = [#tpu.dimension_semantics<parallel>], iteration_bounds = array<i64: 2>, scalar_prefetch = 0 : i64, scratch_operands = 0 : i64, tpu.core_type = #tpu.core_type<tc>, window_params = [{transform_indices = @transform_0, window_bounds = array<i64: 128, 8>}, {pipeline_mode = #tpu.pipeline_mode<synchronous>, transform_indices = @transform_1, window_bounds = array<i64: 128, 128>}, {pipeline_mode = #tpu.pipeline_mode<synchronous>, transform_indices = @transform_2, window_bounds = array<i64: 128, 128>}, {pipeline_mode = #tpu.pipeline_mode<synchronous>, transform_indices = @transform_3, window_bounds = array<i64: 1, 128>}, {transform_indices = @transform_4, window_bounds = array<i64: 128, 128>}]} {
    %c0 = arith.constant 0 : index
    %c0_0 = arith.constant 0 : index
    %0 = vector.load %arg1[%c0, %c0_0] : memref<128x8xi32, #tpu.memory_space<vmem>>, vector<128x8xi32>
    %1 = tpu.iota {dimensions = array<i32: 1>} : vector<128x128xi32>
    %cst = arith.constant 0.000000e+00 : f32
    %2 = vector.broadcast %cst : f32 to vector<128x128xf32>
    %3 = vector.extract_strided_slice %0 {offsets = [0, 0], sizes = [128, 1], strides = [1, 1]} : vector<128x8xi32> to vector<128x1xi32>
    %4 = vector.broadcast %3 : vector<128x1xi32> to vector<128x128xi32>
    %5 = arith.cmpi eq, %4, %1 : vector<128x128xi32>
    %6 = arith.extui %5 : vector<128x128xi1> to vector<128x128xi32>
    %7 = arith.sitofp %6 : vector<128x128xi32> to vector<128x128xf32>
    %8 = arith.addf %2, %7 : vector<128x128xf32>
    %9 = vector.extract_strided_slice %0 {offsets = [0, 1], sizes = [128, 1], strides = [1, 1]} : vector<128x8xi32> to vector<128x1xi32>
    %10 = vector.broadcast %9 : vector<128x1xi32> to vector<128x128xi32>
    %11 = arith.cmpi eq, %10, %1 : vector<128x128xi32>
    %12 = arith.extui %11 : vector<128x128xi1> to vector<128x128xi32>
    %13 = arith.sitofp %12 : vector<128x128xi32> to vector<128x128xf32>
    %14 = arith.addf %8, %13 : vector<128x128xf32>
    %15 = vector.extract_strided_slice %0 {offsets = [0, 2], sizes = [128, 1], strides = [1, 1]} : vector<128x8xi32> to vector<128x1xi32>
    %16 = vector.broadcast %15 : vector<128x1xi32> to vector<128x128xi32>
    %17 = arith.cmpi eq, %16, %1 : vector<128x128xi32>
    %18 = arith.extui %17 : vector<128x128xi1> to vector<128x128xi32>
    %19 = arith.sitofp %18 : vector<128x128xi32> to vector<128x128xf32>
    %20 = arith.addf %14, %19 : vector<128x128xf32>
    %21 = vector.extract_strided_slice %0 {offsets = [0, 3], sizes = [128, 1], strides = [1, 1]} : vector<128x8xi32> to vector<128x1xi32>
    %22 = vector.broadcast %21 : vector<128x1xi32> to vector<128x128xi32>
    %23 = arith.cmpi eq, %22, %1 : vector<128x128xi32>
    %24 = arith.extui %23 : vector<128x128xi1> to vector<128x128xi32>
    %25 = arith.sitofp %24 : vector<128x128xi32> to vector<128x128xf32>
    %26 = arith.addf %20, %25 : vector<128x128xf32>
    %27 = vector.extract_strided_slice %0 {offsets = [0, 4], sizes = [128, 1], strides = [1, 1]} : vector<128x8xi32> to vector<128x1xi32>
    %28 = vector.broadcast %27 : vector<128x1xi32> to vector<128x128xi32>
    %29 = arith.cmpi eq, %28, %1 : vector<128x128xi32>
    %30 = arith.extui %29 : vector<128x128xi1> to vector<128x128xi32>
    %31 = arith.sitofp %30 : vector<128x128xi32> to vector<128x128xf32>
    %32 = arith.addf %26, %31 : vector<128x128xf32>
    %33 = vector.extract_strided_slice %0 {offsets = [0, 5], sizes = [128, 1], strides = [1, 1]} : vector<128x8xi32> to vector<128x1xi32>
    %34 = vector.broadcast %33 : vector<128x1xi32> to vector<128x128xi32>
    %35 = arith.cmpi eq, %34, %1 : vector<128x128xi32>
    %36 = arith.extui %35 : vector<128x128xi1> to vector<128x128xi32>
    %37 = arith.sitofp %36 : vector<128x128xi32> to vector<128x128xf32>
    %38 = arith.addf %32, %37 : vector<128x128xf32>
    %39 = vector.extract_strided_slice %0 {offsets = [0, 6], sizes = [128, 1], strides = [1, 1]} : vector<128x8xi32> to vector<128x1xi32>
    %40 = vector.broadcast %39 : vector<128x1xi32> to vector<128x128xi32>
    %41 = arith.cmpi eq, %40, %1 : vector<128x128xi32>
    %42 = arith.extui %41 : vector<128x128xi1> to vector<128x128xi32>
    %43 = arith.sitofp %42 : vector<128x128xi32> to vector<128x128xf32>
    %44 = arith.addf %38, %43 : vector<128x128xf32>
    %45 = vector.extract_strided_slice %0 {offsets = [0, 7], sizes = [128, 1], strides = [1, 1]} : vector<128x8xi32> to vector<128x1xi32>
    %46 = vector.broadcast %45 : vector<128x1xi32> to vector<128x128xi32>
    %47 = arith.cmpi eq, %46, %1 : vector<128x128xi32>
    %48 = arith.extui %47 : vector<128x128xi1> to vector<128x128xi32>
    %49 = arith.sitofp %48 : vector<128x128xi32> to vector<128x128xf32>
    %50 = arith.addf %44, %49 : vector<128x128xf32>
    %51 = arith.truncf %50 : vector<128x128xf32> to vector<128x128xbf16>
    %c0_1 = arith.constant 0 : index
    %c0_2 = arith.constant 0 : index
    %52 = vector.load %arg2[%c0_1, %c0_2] : memref<128x128xbf16, #tpu.memory_space<vmem>>, vector<128x128xbf16>
    %cst_3 = arith.constant dense<0.000000e+00> : vector<128x128xf32>
    %53 = tpu.matmul %51, %52, %cst_3 {dimension_numbers = #tpu.dot_dimension_numbers<[1], [0], [0], [1], [0, 0, 1, 1], [], []>} : vector<128x128xbf16>, vector<128x128xbf16>, vector<128x128xf32> -> vector<128x128xf32>
    %54 = arith.truncf %53 : vector<128x128xf32> to vector<128x128xbf16>
    %c0_4 = arith.constant 0 : index
    %c0_5 = arith.constant 0 : index
    %55 = vector.load %arg3[%c0_4, %c0_5] : memref<128x128xbf16, #tpu.memory_space<vmem>>, vector<128x128xbf16>
    %cst_6 = arith.constant dense<0.000000e+00> : vector<128x128xf32>
    %56 = tpu.matmul %54, %55, %cst_6 {dimension_numbers = #tpu.dot_dimension_numbers<[1], [0], [0], [1], [0, 0, 1, 1], [], []>} : vector<128x128xbf16>, vector<128x128xbf16>, vector<128x128xf32> -> vector<128x128xf32>
    %c0_7 = arith.constant 0 : index
    %c0_8 = arith.constant 0 : index
    %57 = vector.load %arg4[%c0_7, %c0_8] : memref<1x128xf32, #tpu.memory_space<vmem>>, vector<1x128xf32>
    %58 = vector.broadcast %57 : vector<1x128xf32> to vector<128x128xf32>
    %59 = arith.addf %56, %58 : vector<128x128xf32>
    %c0_9 = arith.constant 0 : index
    %c0_10 = arith.constant 0 : index
    %60 = vector.load %arg5[%c0_9, %c0_10] : memref<128x128xf32, #tpu.memory_space<vmem>>, vector<128x128xf32>
    tpu.vector_store %arg5[%c0_9, %c0_10], %59 {strides = array<i32>} : memref<128x128xf32, #tpu.memory_space<vmem>>, vector<128x128xf32>,
    return
  }
  func.func @transform_0(%arg0: i32) -> (i32, i32) {
    %c0_i32 = arith.constant 0 : i32
    %c0_i32_0 = arith.constant 0 : i32
    return %arg0, %c0_i32 : i32, i32
  }
  func.func @transform_1(%arg0: i32) -> (i32, i32) {
    %c0_i32 = arith.constant 0 : i32
    %c0_i32_0 = arith.constant 0 : i32
    %c0_i32_1 = arith.constant 0 : i32
    return %c0_i32, %c0_i32_0 : i32, i32
  }
  func.func @transform_2(%arg0: i32) -> (i32, i32) {
    %c0_i32 = arith.constant 0 : i32
    %c0_i32_0 = arith.constant 0 : i32
    %c0_i32_1 = arith.constant 0 : i32
    return %c0_i32, %c0_i32_0 : i32, i32
  }
  func.func @transform_3(%arg0: i32) -> (i32, i32) {
    %c0_i32 = arith.constant 0 : i32
    %c0_i32_0 = arith.constant 0 : i32
    %c0_i32_1 = arith.constant 0 : i32
    return %c0_i32, %c0_i32_0 : i32, i32
  }
  func.func @transform_4(%arg0: i32) -> (i32, i32) {
    %c0_i32 = arith.constant 0 : i32
    %c0_i32_0 = arith.constant 0 : i32
    return %arg0, %c0_i32 : i32, i32
  }
}

</mosaic_0001>

<bundles_post_ra>
// kernel: tpu_custom_call.1
= control target key start
LH: loop header
LB: loop body
LE: loop exit
PB: predicated region body
PF: predicated region fallthrough
CT: control target
= control target key end

     0   :  { %9 = vsyncpa [#allocation3], 0  ;;  %s2950_s0 = inlined_call_operand.vmem [shape: s32[256,8], index: 0, kind: input, shape index: {}]   ;;  %s2951_s1 = inlined_call_operand.vmem [shape: bf16[128,128], index: 1, kind: input, shape index: {}]   ;;  %s2952_s2 = inlined_call_operand.vmem [shape: bf16[128,128], index: 2, kind: input, shape index: {}]   ;;  %s2953_s3 = inlined_call_operand.vmem [shape: f32[1,128], index: 3, kind: input, shape index: {}]   ;;  %s2954_s4 = inlined_call_operand.hbm [shape: f32[256,128], index: 4, kind: output, shape index: {}]  }
   0x1   :  { %11 = vsyncpa [#allocation3 + $0x1], 0  ;;  %s2037_s15 = smov 0   ;;  %s2039_s16 = smov 0  }
   0x2   :  { %s2041_s17 = smov 0   ;;  %s2043_s18 = smov 0  }
   0x3 LB: > { %s2058_s19 = sadd.s32 4294967295, %s1998_s18   ;;  %s1551_s20 = sadd.s32 4294967294, %s1998_s18   ;;  %s1998_s18 = sphi %s2043_s18, %s2994_s18   ;;  %s1994_s17 = sphi %s2041_s17, %s2993_s17   ;;  %s1990_s16 = sphi %s2039_s16, %s2992_s16   ;;  %s1986_s15 = sphi %s2037_s15, %s2991_s15  }
   0x4   : > { %s2062_s21 = sadd.s32 1, %s1998_s18   ;;  %s113_s22 = sadd.s32 1, %s1994_s17 }
   0x5   : > { %s110_s23 = ssub.s32 %s1998_s18, %s2062_s21  ;;  %p123_p0 = scmp.ne.s32.totalorder %s1994_s17, %s1990_s16 }
   0x6   : > { %p111_p1 = scmp.eq.s32.totalorder %s110_s23, 0  ;;  %p124_p2 = scmp.eq.s32.totalorder %s2058_s19, 1 }
   0x7   : > { %p129_p3 = scmp.ne.s32.totalorder %s1990_s16, %s1986_s15  ;;  %p130_p4 = scmp.eq.s32.totalorder %s1551_s20, 1 }
   0x8   : > { %s2073_s24 = scalar_select %p111_p1, %s1994_s17, %s113_s22  }
   0x9   : > { %p2075_p5 = por %p124_p2, %p123_p0  ;;  %p2079_p6 = por %p130_p4, %p129_p3 }
   0xa   : > { %p1554_p7 = scmp.ge.s32.totalorder %s1998_s18, 1  ;;  %p166_p8 = scmp.lt.s32.totalorder %s1998_s18, 3 }
   0xc   : > { %p167_p9 = pnand %p1554_p7, %p166_p8 }
   0xe   : > { %170 = sbr.rel (%p167_p9) target bundleno = 946 (0x3b2), region = 36 }
  0x13   : > { %s1556_s27 = sshll.u32 %s2058_s19, 4  ;;  %v2966_v0 = vmov 1   ;;  %v2968_v1 = vmov 0   ;;  %v2962_v9 = vmov 2   ;;  %v2955_v13 = vmov 3   ;;  %v1918_v31 = vld [vmem:[%s2951_s1 + $0x38] sm:$0xff]  }
  0x14   : > { %1856 = vset.pattern.permute.xlu1 %v2966_v0  ;;  %1855 = vset.pattern.permute.xlu0 %v2968_v1  ;;  %p193_p10 = scmp.lt.s32.totalorder %s1556_s27, 31  ;;  %v2959_v15 = vmov 4   ;;  %v2964_v19 = vmov 5   ;;  %v2960_v21 = vmov 6   ;;  %v2957_v22 = vmov 7   ;;  %v1919_v33 = vld [vmem:[%s2951_s1 + $0x30] sm:$0xff]  }
  0x15   : > { %1741 = vmatprep.subr.bf16.mxu0 %v1918_v31  ;;  %v1920_v36 = vld [vmem:[%s2951_s1 + $0x28] sm:$0xff]   ;;  %v1921_v40 = vld [vmem:[%s2951_s1 + $0x20] sm:$0xff]   ;;  %v216_v42 = vlaneseq  ;;  %v1922_v44 = vld [vmem:[%s2951_s1 + $0x18] sm:$0xff]   ;;  %v2008_v50 = vmov 0.0   ;;  %s189_s30 = sand.u32 1, %s1990_s16   ;;  %s1708_s10 = sshll.u32 %s2058_s19, 11 }
  0x16   : > { %s2996_s27 = smov (!%p193_p10, %s1556_s27), 31  ;;  %1742 = vmatpush3.bf16.msra.mxu0 %v1918_v31  ;;  %v1923_v48 = vld [vmem:[%s2951_s1 + $0x10] sm:$0xff]   ;;  %v1924_v53 = vld [vmem:[%s2951_s1 + $0x8] sm:$0xff]   ;;  %v1925_v58 = vld [vmem:[%s2951_s1] sm:$0xff]   ;;  %s1555_s6 = sshll.u32 %s189_s30, 7 }
  0x17   : > { %s1557_s28 = sshll.u32 %s2996_s27, 3  ;;  %1743 = vmatprep.subr.bf16.mxu0 %v1919_v33  ;;  %v2284_v45 = vand.u32 127, %v216_v42  ;;  %s2881_s9 = scalar_lea.vmem [#allocation2], %s1555_s6 }
  0x18   : > { %s2091_s5 = scalar_lea.vmem %s2950_s0, %s1557_s28  ;;  %s1489_s11 = sshll.u32 %s2881_s9, 4  ;;  %s2904_s11 = int_to_ptr.vmem [resolvable:$true] %s1489_s11 }
  0x19   : > { %v2094_v2 = vld [vmem:[%s2091_s5] sm:$0xff]  ;;  %v2099_v3 = vld [vmem:[%s2091_s5 + $0x8] sm:$0xff]  ;;  %v2102_v4 = vld [vmem:[%s2091_s5 + $0x10] sm:$0xff]  ;;  %s2902_s14 = scalar_lea.hbm %s2954_s4, %s1708_s10  ;;  %s2910_s19 = scalar_lea.sflag [#allocation3], %s189_s30 }
  0x1a   : > { %331 = vperm.xlu1 %1856, %v2094_v2   ;;  %219 = vperm.xlu0 %1855, %v2094_v2   ;;  %v2107_v5 = vld [vmem:[%s2091_s5 + $0x18] sm:$0xff]  ;;  %v2110_v6 = vld [vmem:[%s2091_s5 + $0x20] sm:$0xff]  ;;  %v2118_v7 = vld [vmem:[%s2091_s5 + $0x30] sm:$0xff]  ;;  %s1938_s20 = scalar_lea.vmem %s2904_s11, 2048  ;;  %s2009_s22 = smov [#allocation2]  }
  0x1b   : > { %v2123_v8 = vld [vmem:[%s2091_s5 + $0x48] sm:$0xff]  ;;  %v2129_v10 = vld [vmem:[%s2091_s5 + $0x58] sm:$0xff]  ;;  %v2134_v11 = vld [vmem:[%s2091_s5 + $0x60] sm:$0xff]  ;;  %1744 = vmatpush3.bf16.msra.mxu0 %v1919_v33  ;;  %p1939_p11 = scmp.ne.s32.totalorder %s2904_s11, %s1938_s20  ;;  %s1942_s23 = sshll.u32 %s2009_s22, 4  ;;  %s1943_s23 = int_to_ptr.vmem [resolvable:$false] %s1942_s23 }
  0x1c   : > { %v2139_v12 = vld [vmem:[%s2091_s5 + $0x70] sm:$0xff]  ;;  %v2148_v14 = vld [vmem:[%s2091_s5 + $0x28] sm:$0xff]  ;;  %v2154_v16 = vld [vmem:[%s2091_s5 + $0x38] sm:$0xff]  ;;  %1745 = vmatprep.subr.bf16.mxu0 %v1920_v36  ;;  %s1944_s27 = scalar_lea.vmem %s1943_s23, 4096  ;;  %p1945_p0 = scmp.lt.s32.totalorder %s2904_s11, %s1943_s23 }
  0x1d   : > { %v2159_v17 = vld [vmem:[%s2091_s5 + $0x68] sm:$0xff]  ;;  %v2164_v18 = vld [vmem:[%s2091_s5 + $0x78] sm:$0xff]  ;;  %v2178_v20 = vld [vmem:[%s2091_s5 + $0x50] sm:$0xff]  ;;  %p1940_p12 = pnand %p1939_p11, %p2075_p5  ;;  %p1946_p1 = scmp.lt.s32.totalorder %s1944_s27, %s1938_s20 }
  0x1e   : > { %334 = vperm.xlu1 %1856, %v2099_v3   ;;  %222 = vperm.xlu0 %1855, %v2099_v3   ;;  %v2263_v38 = vld [vmem:[%s2091_s5 + $0x40] sm:$0xff] }
  0x1f   : > { %1746 = vmatpush3.bf16.msra.mxu0 %v1920_v36  ;;  %p1941_p13 = pneg %p1940_p12  ;;  %p1947_p2 = por %p1946_p1, %p1945_p0 }
  0x20   : > { %1747 = vmatprep.subr.bf16.mxu0 %v1921_v40 }
  0x21   : > { %p1948_p3 = pnand %p1947_p2, %p1941_p13 }
  0x22   : > { %1857 = vset.pattern.permute.xlu1 %v2968_v1  ;;  %225 = vperm.xlu0 %1855, %v2102_v4  }
  0x23   : > { %228 = vperm.xlu1 %1857, %v2107_v5   ;;  %1748 = vmatpush3.bf16.msra.mxu0 %v1921_v40 }
  0x24   : > { %1749 = vmatprep.subr.bf16.mxu0 %v1922_v44 }
  0x26   : > { %231 = vperm.xlu0 %1855, %v2110_v6  }
  0x27   : > { %1858 = vset.pattern.permute.xlu1 %v2966_v0  ;;  %1750 = vmatpush3.bf16.msra.mxu0 %v1922_v44 }
  0x28   : > { %340 = vperm.xlu1 %1858, %v2107_v5   ;;  %1751 = vmatprep.subr.bf16.mxu0 %v1923_v48 }
  0x2a   : > { %237 = vperm.xlu0 %1855, %v2118_v7  }
  0x2b   : > { %1752 = vmatpush3.bf16.msra.mxu0 %v1923_v48 }
  0x2c   : > { %1859 = vset.pattern.permute.xlu1 %v2962_v9  ;;  %1753 = vmatprep.subr.bf16.mxu0 %v1924_v53 }
  0x2d   : > { %443 = vperm.xlu1 %1859, %v2094_v2  }
  0x2e   : > { %246 = vperm.xlu0 %1855, %v2123_v8  }
  0x2f   : > { %1754 = vmatpush3.bf16.msra.mxu0 %v1924_v53 }
  0x30   : > { %1755 = vmatprep.subr.bf16.mxu0 %v1925_v58 }
  0x31   : > { %449 = vperm.xlu1 %1859, %v2102_v4  }
  0x32   : > { %252 = vperm.xlu0 %1855, %v2129_v10  }
  0x33   : > { %1756 = vmatpush3.bf16.msra.mxu0 %v1925_v58 }
  0x35   : > { %452 = vperm.xlu1 %1859, %v2107_v5  }
  0x36   : > { %255 = vperm.xlu0 %1855, %v2134_v11  }
  0x39   : > { %1860 = vset.pattern.permute.xlu1 %v2955_v13 }
  0x3a   : > { %558 = vperm.xlu1 %1860, %v2099_v3   ;;  %261 = vperm.xlu0 %1855, %v2139_v12  }
  0x3e   : > { %561 = vperm.xlu1 %1860, %v2102_v4   ;;  %1895 = vset.pattern.permute.xlu0 %v2966_v0 }
  0x3f   : > { %337 = vperm.xlu0 %1895, %v2102_v4  }
  0x42   : > { %1861 = vset.pattern.permute.xlu1 %v2959_v15 }
  0x43   : > { %667 = vperm.xlu1 %1861, %v2094_v2   ;;  %346 = vperm.xlu0 %1895, %v2148_v14  }
  0x47   : > { %673 = vperm.xlu1 %1861, %v2102_v4   ;;  %352 = vperm.xlu0 %1895, %v2154_v16  }
  0x4b   : > { %676 = vperm.xlu1 %1861, %v2107_v5   ;;  %370 = vperm.xlu0 %1895, %v2159_v17  }
  0x4f   : > { %1862 = vset.pattern.permute.xlu1 %v2968_v1  ;;  %376 = vperm.xlu0 %1895, %v2164_v18  }
  0x50   : > { %234 = vperm.xlu1 %1862, %v2148_v14  }
  0x53   : > { %1898 = vset.pattern.permute.xlu0 %v2962_v9 }
  0x54   : > { %1863 = vset.pattern.permute.xlu1 %v2966_v0  ;;  %446 = vperm.xlu0 %1898, %v2099_v3  }
  0x55   : > { %343 = vperm.xlu1 %1863, %v2110_v6  }
  0x58   : > { %455 = vperm.xlu0 %1898, %v2110_v6  }
  0x59   : > { %1864 = vset.pattern.permute.xlu1 %v2964_v19 }
  0x5a   : > { %779 = vperm.xlu1 %1864, %v2094_v2  }
  0x5c   : > { %470 = vperm.xlu0 %1898, %v2123_v8  }
  0x5e   : > { %782 = vperm.xlu1 %1864, %v2099_v3  }
  0x60   : > { %473 = vperm.xlu0 %1898, %v2178_v20  }
  0x62   : > { %1865 = vset.pattern.permute.xlu1 %v2968_v1 }
  0x63   : > { %240 = vperm.xlu1 %1865, %v2154_v16  }
  0x64   : > { %479 = vperm.xlu0 %1898, %v2134_v11  }
  0x67   : > { %1866 = vset.pattern.permute.xlu1 %v2966_v0 }
  0x68   : > { %349 = vperm.xlu1 %1866, %v2118_v7   ;;  %1900 = vset.pattern.permute.xlu0 %v2955_v13 }
  0x69   : > { %555 = vperm.xlu0 %1900, %v2094_v2  }
  0x6c   : > { %1867 = vset.pattern.permute.xlu1 %v2964_v19 }
  0x6d   : > { %785 = vperm.xlu1 %1867, %v2102_v4   ;;  %564 = vperm.xlu0 %1900, %v2107_v5  }
  0x71   : > { %788 = vperm.xlu1 %1867, %v2107_v5   ;;  %567 = vperm.xlu0 %1900, %v2110_v6  }
  0x75   : > { %1868 = vset.pattern.permute.xlu1 %v2962_v9  ;;  %582 = vperm.xlu0 %1900, %v2123_v8  }
  0x76   : > { %458 = vperm.xlu1 %1868, %v2148_v14  }
  0x79   : > { %585 = vperm.xlu0 %1900, %v2178_v20  }
  0x7a   : > { %1869 = vset.pattern.permute.xlu1 %v2960_v21 }
  0x7b   : > { %891 = vperm.xlu1 %1869, %v2094_v2  }
  0x7d   : > { %591 = vperm.xlu0 %1900, %v2134_v11  }
  0x7f   : > { %1870 = vset.pattern.permute.xlu1 %v2962_v9 }
  0x80   : > { %461 = vperm.xlu1 %1870, %v2118_v7  }
  0x81   : > { %1905 = vset.pattern.permute.xlu0 %v2957_v22 }
  0x82   : > { %1006 = vperm.xlu0 %1905, %v2099_v3  }
  0x84   : > { %464 = vperm.xlu1 %1870, %v2154_v16  }
  0x86   : > { %1009 = vperm.xlu0 %1905, %v2102_v4  }
  0x88   : > { %1871 = vset.pattern.permute.xlu1 %v2960_v21 }
  0x89   : > { %900 = vperm.xlu1 %1871, %v2107_v5  }
  0x8a   : > { %1021 = vperm.xlu0 %1905, %v2118_v7  }
  0x8d   : > { %1872 = vset.pattern.permute.xlu1 %v2955_v13 }
  0x8e   : > { %570 = vperm.xlu1 %1872, %v2148_v14   ;;  %1030 = vperm.xlu0 %1905, %v2123_v8  }
  0x92   : > { %1873 = vset.pattern.permute.xlu1 %v2957_v22  ;;  %1033 = vperm.xlu0 %1905, %v2178_v20  }
  0x93   : > { %1003 = vperm.xlu1 %1873, %v2094_v2  }
  0x95   : > { %v2216_v23 = vpop.permute.xlu1 %331  ;;  %v2218_v24 = vpop.permute.xlu0 %219 }
  0x96   : > { %1909 = vset.pattern.permute.xlu0 %v2959_v15  ;;  %vm378_vm8 = vcmp.eq.s32.totalorder %v2216_v23, %v2284_v45  ;;  %vm266_vm9 = vcmp.eq.s32.totalorder %v2218_v24, %v2284_v45 }
  0x97   : > { %1874 = vset.pattern.permute.xlu1 %v2955_v13  ;;  %670 = vperm.xlu0 %1909, %v2099_v3   ;;  %v1574_v58 = vsel %vm378_vm8, 1.0, %v2008_v50 }
  0x98   : > { %573 = vperm.xlu1 %1874, %v2118_v7  }
  0x99   : > { %v2224_v25 = vpop.permute.xlu1 %334  ;;  %v2226_v26 = vpop.permute.xlu0 %222 }
  0x9a   : > { %vm379_vm2 = vcmp.eq.s32.totalorder %v2224_v25, %v2284_v45  ;;  %vm267_vm3 = vcmp.eq.s32.totalorder %v2226_v26, %v2284_v45 }
  0x9b   : > { %679 = vperm.xlu0 %1909, %v2110_v6  }
  0x9c   : > { %576 = vperm.xlu1 %1874, %v2154_v16  }
  0x9d   : > { %v226_v27 = vpop.permute.xlu0 %225 }
  0x9e   : > { %v2230_v28 = vpop.permute.xlu1 %228  ;;  %vm268_vm0 = vcmp.eq.s32.totalorder %v226_v27, %v2284_v45 }
  0x9f   : > { %688 = vperm.xlu0 %1909, %v2154_v16   ;;  %v1560_v51 = vsel %vm268_vm0, 1.0, %v2008_v50 }
  0xa0   : > { %1875 = vset.pattern.permute.xlu1 %v2957_v22 }
  0xa1   : > { %1012 = vperm.xlu1 %1875, %v2107_v5   ;;  %v2235_v29 = vpop.permute.xlu0 %231 }
  0xa2   : > { %vm270_vm4 = vcmp.eq.s32.totalorder %v2235_v29, %v2284_v45 }
  0xa3   : > { %v2237_v30 = vpop.permute.xlu1 %340  ;;  %694 = vperm.xlu0 %1909, %v2123_v8   ;;  %v1562_v25 = vsel %vm270_vm4, 1.0, %v2008_v50  ;;  %vm269_vm4 = vcmp.eq.s32.totalorder %v2230_v28, %v2284_v45 }
  0xa4   : > { %v1561_v28 = vsel %vm269_vm4, 1.0, %v2008_v50 }
  0xa5   : > { %1876 = vset.pattern.permute.xlu1 %v2959_v15  ;;  %v2244_v32 = vpop.permute.xlu0 %237 }
  0xa6   : > { %682 = vperm.xlu1 %1876, %v2148_v14  }
  0xa7   : > { %703 = vperm.xlu0 %1909, %v2134_v11  }
  0xa8   : > { %v2251_v34 = vpop.permute.xlu1 %443 }
  0xa9   : > { %v2253_v35 = vpop.permute.xlu0 %246  ;;  %vm490_vm10 = vcmp.eq.s32.totalorder %v2251_v34, %v2284_v45 }
  0xaa   : > { %685 = vperm.xlu1 %1876, %v2118_v7  }
  0xab   : > { %712 = vperm.xlu0 %1909, %v2164_v18  }
  0xac   : > { %v2260_v37 = vpop.permute.xlu1 %449 }
  0xad   : > { %v2265_v39 = vpop.permute.xlu0 %252 }
  0xae   : > { %1877 = vset.pattern.permute.xlu1 %v2968_v1 }
  0xaf   : > { %243 = vperm.xlu1 %1877, %v2263_v38   ;;  %1912 = vset.pattern.permute.xlu0 %v2964_v19 }
  0xb0   : > { %v2273_v41 = vpop.permute.xlu1 %452  ;;  %791 = vperm.xlu0 %1912, %v2110_v6  }
  0xb1   : > { %v2276_v43 = vpop.permute.xlu0 %255 }
  0xb3   : > { %1878 = vset.pattern.permute.xlu1 %v2966_v0 }
  0xb4   : > { %355 = vperm.xlu1 %1878, %v2263_v38   ;;  %797 = vperm.xlu0 %1912, %v2118_v7  }
  0xb5   : > { %v2286_v46 = vpop.permute.xlu1 %558  ;;  %v2288_v47 = vpop.permute.xlu0 %261 }
  0xb6   : > { %2971 = vst [vmem:[#allocation5_spill] sm:$0xff] %v2288_v47  ;;  %v2977_v47 = vmov 1  }
  0xb8   : > { %358 = vperm.xlu1 %1878, %v2123_v8   ;;  %818 = vperm.xlu0 %1912, %v2159_v17  }
  0xb9   : > { %v2296_v49 = vpop.permute.xlu1 %561 }
  0xba   : > { %v338_v52 = vpop.permute.xlu0 %337 }
  0xbb   : > { %vm380_vm1 = vcmp.eq.s32.totalorder %v338_v52, %v2284_v45 }
  0xbc   : > { %v1576_v54 = vsel %vm380_vm1, 1.0, %v2008_v50  ;;  %1879 = vset.pattern.permute.xlu1 %v2964_v19  ;;  %1914 = vset.pattern.permute.xlu0 %v2960_v21 }
  0xbd   : > { %v2306_v55 = vadd.f32 %v1576_v54, %v1560_v51  ;;  %794 = vperm.xlu1 %1879, %v2148_v14   ;;  %894 = vperm.xlu0 %1914, %v2099_v3   ;;  %v1575_v3 = vsel %vm379_vm2, 1.0, %v2008_v50 }
  0xbe   : > { %v2310_v56 = vpop.permute.xlu1 %667  ;;  %v2312_v57 = vpop.permute.xlu0 %346 }
  0xc1   : > { %1880 = vset.pattern.permute.xlu1 %v2968_v1  ;;  %897 = vperm.xlu0 %1914, %v2102_v4   ;;  %v1559_v4 = vsel %vm267_vm3, 1.0, %v2008_v50  ;;  %vm381_vm3 = vcmp.eq.s32.totalorder %v2237_v30, %v2284_v45 }
  0xc2   : > { %249 = vperm.xlu1 %1880, %v2178_v20   ;;  %v2320_v59 = vpop.permute.xlu1 %673  ;;  %v2322_v60 = vpop.permute.xlu0 %352 }
  0xc3   : > { %vm385_vm13 = vcmp.eq.s32.totalorder %v2322_v60, %v2284_v45 }
  0xc5   : > { %909 = vperm.xlu0 %1914, %v2118_v7   ;;  %v427_v7 = vadd.f32 %v1575_v3, %v1559_v4  ;;  %v1558_v3 = vsel %vm266_vm9, 1.0, %v2008_v50  ;;  %v1590_v4 = vsel %vm490_vm10, 1.0, %v2008_v50  ;;  %vm275_vm9 = vcmp.eq.s32.totalorder %v2253_v35, %v2284_v45 }
  0xc6   : > { %1881 = vset.pattern.permute.xlu1 %v2966_v0  ;;  %v2326_v61 = vpop.permute.xlu1 %676  ;;  %v2328_v62 = vpop.permute.xlu0 %370  ;;  %v426_v23 = vadd.f32 %v1574_v58, %v1558_v3  ;;  %v2513_v35 = vsel %vm275_vm9, 1.0, %v2008_v50 }
  0xc7   : > { %361 = vperm.xlu1 %1881, %v2178_v20  }
  0xc9   : > { %918 = vperm.xlu0 %1914, %v2123_v8  }
  0xca   : > { %v2336_v63 = vpop.permute.xlu0 %376 }
  0xcb   : > { %2972 = vst [vmem:[#allocation6_spill] sm:$0xff] %v2336_v63  ;;  %364 = vperm.xlu1 %1881, %v2129_v10   ;;  %v2339_v2 = vpop.permute.xlu1 %234 }
  0xcd   : > { %921 = vperm.xlu0 %1914, %v2178_v20  }
  0xcf   : > { %1882 = vset.pattern.permute.xlu1 %v2964_v19  ;;  %v447_v5 = vpop.permute.xlu0 %446 }
  0xd0   : > { %vm491_vm5 = vcmp.eq.s32.totalorder %v447_v5, %v2284_v45  ;;  %800 = vperm.xlu1 %1882, %v2154_v16   ;;  %v344_v26 = vpop.permute.xlu1 %343 }
  0xd1   : > { %v1591_v27 = vsel %vm491_vm5, 1.0, %v2008_v50  ;;  %vm382_vm6 = vcmp.eq.s32.totalorder %v344_v26, %v2284_v45  ;;  %927 = vperm.xlu0 %1914, %v2134_v11   ;;  %vm272_vm5 = vcmp.eq.s32.totalorder %v2244_v32, %v2284_v45 }
  0xd2   : > { %v2353_v29 = vadd.f32 %v1591_v27, %v427_v7  ;;  %v1578_v31 = vsel %vm382_vm6, 1.0, %v2008_v50  ;;  %v538_v7 = vadd.f32 %v1590_v4, %v426_v23  ;;  %vm492_vm6 = vcmp.eq.s32.totalorder %v2260_v37, %v2284_v45 }
  0xd3   : > { %v430_v33 = vadd.f32 %v1578_v31, %v1562_v25  ;;  %v456_v36 = vpop.permute.xlu0 %455  ;;  %v1592_v37 = vsel %vm492_vm6, 1.0, %v2008_v50 }
  0xd4   : > { %vm494_vm7 = vcmp.eq.s32.totalorder %v456_v36, %v2284_v45  ;;  %1883 = vset.pattern.permute.xlu1 %v2962_v9 }
  0xd5   : > { %v1594_v40 = vsel %vm494_vm7, 1.0, %v2008_v50  ;;  %467 = vperm.xlu1 %1883, %v2263_v38   ;;  %v2360_v42 = vpop.permute.xlu1 %779  ;;  %936 = vperm.xlu0 %1914, %v2164_v18   ;;  %vm493_vm7 = vcmp.eq.s32.totalorder %v2273_v41, %v2284_v45 }
  0xd6   : > { %v542_v44 = vadd.f32 %v1594_v40, %v430_v33  ;;  %v1593_v41 = vsel %vm493_vm7, 1.0, %v2008_v50 }
  0xd7   : > { %v2363_v48 = vpop.permute.xlu0 %470 }
  0xd8   : > { %vm499_vm6 = vcmp.eq.s32.totalorder %v2363_v48, %v2284_v45 }
  0xd9   : > { %1884 = vset.pattern.permute.xlu1 %v2960_v21  ;;  %v2366_v51 = vpop.permute.xlu1 %782  ;;  %1917 = vset.pattern.permute.xlu0 %v2957_v22 }
  0xda   : > { %903 = vperm.xlu1 %1884, %v2110_v6   ;;  %1042 = vperm.xlu0 %1917, %v2159_v17  }
  0xdb   : > { %v2371_v52 = vpop.permute.xlu0 %473 }
  0xde   : > { %906 = vperm.xlu1 %1884, %v2148_v14   ;;  %v241_v53 = vpop.permute.xlu1 %240 }
  0xdf   : > { %v2380_v54 = vpop.permute.xlu0 %479  ;;  %vm273_vm14 = vcmp.eq.s32.totalorder %v241_v53, %v2284_v45 }
  0xe0   : > { %2973 = vst [vmem:[#allocation7_spill] sm:$0xff] %v2380_v54 }
  0xe2   : > { %1885 = vset.pattern.permute.xlu1 %v2962_v9  ;;  %v1565_v9 = vsel %vm273_vm14, 1.0, %v2008_v50 }
  0xe3   : > { %476 = vperm.xlu1 %1885, %v2129_v10   ;;  %v2387_v24 = vpop.permute.xlu1 %349 }
  0xe4   : > { %v556_v5 = vpop.permute.xlu0 %555  ;;  %vm384_vm8 = vcmp.eq.s32.totalorder %v2387_v24, %v2284_v45 }
  0xe5   : > { %vm602_vm11 = vcmp.eq.s32.totalorder %v556_v5, %v2284_v45  ;;  %v1580_v24 = vsel %vm384_vm8, 1.0, %v2008_v50 }
  0xe6   : > { %v1606_v34 = vsel %vm602_vm11, 1.0, %v2008_v50  ;;  %vm603_vm11 = vcmp.eq.s32.totalorder %v2286_v46, %v2284_v45 }
  0xe7   : > { %v2391_v25 = vadd.f32 %v1606_v34, %v538_v7  ;;  %1886 = vset.pattern.permute.xlu1 %v2960_v21  ;;  %v1581_v21 = vsel %vm385_vm13, 1.0, %v2008_v50  ;;  %vm716_vm13 = vcmp.eq.s32.totalorder %v2320_v59, %v2284_v45 }
  0xe8   : > { %912 = vperm.xlu1 %1886, %v2154_v16   ;;  %v2395_v26 = vpop.permute.xlu1 %785  ;;  %v2397_v27 = vpop.permute.xlu0 %564  ;;  %v1624_v59 = vsel %vm716_vm13, 1.0, %v2008_v50 }
  0xec   : > { %1887 = vset.pattern.permute.xlu1 %v2955_v13  ;;  %v2400_v31 = vpop.permute.xlu1 %788  ;;  %v568_v33 = vpop.permute.xlu0 %567 }
  0xed   : > { %vm606_vm12 = vcmp.eq.s32.totalorder %v568_v33, %v2284_v45  ;;  %579 = vperm.xlu1 %1887, %v2263_v38  }
  0xee   : > { %v1610_v36 = vsel %vm606_vm12, 1.0, %v2008_v50  ;;  %vm604_vm12 = vcmp.eq.s32.totalorder %v2296_v49, %v2284_v45 }
  0xef   : > { %v654_v40 = vadd.f32 %v1610_v36, %v542_v44 }
  0xf0   : > { %v2405_v58 = vpop.permute.xlu0 %582 }
  0xf1   : > { %1888 = vset.pattern.permute.xlu1 %v2957_v22  ;;  %v2408_v3 = vpop.permute.xlu1 %458 }
  0xf2   : > { %1015 = vperm.xlu1 %1888, %v2110_v6  }
  0xf4   : > { %v2411_v4 = vpop.permute.xlu0 %585 }
  0xf6   : > { %1018 = vperm.xlu1 %1888, %v2148_v14   ;;  %v2414_v23 = vpop.permute.xlu1 %891 }
  0xf8   : > { %v2416_v5 = vpop.permute.xlu0 %591 }
  0xf9   : > { %2974 = vst [vmem:[#allocation8_spill] sm:$0xff] %v2416_v5 }
  0xfa   : > { %1889 = vset.pattern.permute.xlu1 %v2955_v13 }
  0xfb   : > { %588 = vperm.xlu1 %1889, %v2129_v10   ;;  %v2420_v44 = vpop.permute.xlu1 %461 }
  0xfc   : > { %vm496_vm10 = vcmp.eq.s32.totalorder %v2420_v44, %v2284_v45 }
  0xfd   : > { %v2422_v7 = vpop.permute.xlu0 %1006  ;;  %v1596_v44 = vsel %vm496_vm10, 1.0, %v2008_v50  ;;  %vm827_vm10 = vcmp.eq.s32.totalorder %v2366_v51, %v2284_v45 }
  0xff   : > { %1890 = vset.pattern.permute.xlu1 %v2957_v22  ;;  %v465_v34 = vpop.permute.xlu1 %464 }
 0x100   : > { %1024 = vperm.xlu1 %1890, %v2154_v16   ;;  %vm497_vm15 = vcmp.eq.s32.totalorder %v465_v34, %v2284_v45 }
 0x101   : > { %v2426_v6 = vpop.permute.xlu0 %1009  ;;  %v1597_v0 = vsel %vm497_vm15, 1.0, %v2008_v50  ;;  %vm714_vm15 = vcmp.eq.s32.totalorder %v2310_v56, %v2284_v45 }
 0x104   : > { %1891 = vset.pattern.permute.xlu1 %v2959_v15  ;;  %v2429_v14 = vpop.permute.xlu1 %900 }
 0x105   : > { %691 = vperm.xlu1 %1891, %v2263_v38   ;;  %v2432_v33 = vpop.permute.xlu0 %1021 }
 0x109   : > { %697 = vperm.xlu1 %1891, %v2178_v20   ;;  %v2435_v36 = vpop.permute.xlu1 %570  ;;  %v2437_v13 = vpop.permute.xlu0 %1030 }
 0x10a   : > { %2975 = vst [vmem:[#allocation9_spill] sm:$0xff] %v2437_v13 }
 0x10d   : > { %700 = vperm.xlu1 %1891, %v2129_v10   ;;  %v2440_v22 = vpop.permute.xlu0 %1033 }
 0x10e   : > { %2976 = vst [vmem:[#allocation10_spill] sm:$0xff] %v2440_v22  ;;  %v2442_v16 = vpop.permute.xlu1 %1003  ;;  %v433_v22 = vadd.f32 %v1581_v21, %v1565_v9  ;;  %v2978_v9 = vmov 5  }
 0x110   : > { %v545_v34 = vadd.f32 %v1597_v0, %v433_v22 }
 0x111   : > { %1892 = vset.pattern.permute.xlu1 %v2968_v1 }
 0x112   : > { %258 = vperm.xlu1 %1892, %v2159_v17   ;;  %v2450_v15 = vpop.permute.xlu0 %670 }
 0x113   : > { %v574_v19 = vpop.permute.xlu1 %573  ;;  %vm715_vm7 = vcmp.eq.s32.totalorder %v2450_v15, %v2284_v45 }
 0x114   : > { %vm608_vm14 = vcmp.eq.s32.totalorder %v574_v19, %v2284_v45  ;;  %v1608_v19 = vsel %vm604_vm12, 1.0, %v2008_v50  ;;  %vm611_vm12 = vcmp.eq.s32.totalorder %v2405_v58, %v2284_v45 }
 0x116   : > { %1893 = vset.pattern.permute.xlu1 %v2977_v47  ;;  %v680_v60 = vpop.permute.xlu0 %679 }
 0x117   : > { %vm718_vm0 = vcmp.eq.s32.totalorder %v680_v60, %v2284_v45  ;;  %367 = vperm.xlu1 %1893, %v2134_v11   ;;  %v577_v53 = vpop.permute.xlu1 %576  ;;  %v540_v60 = vadd.f32 %v1592_v37, %v2306_v55  ;;  %v1607_v55 = vsel %vm603_vm11, 1.0, %v2008_v50  ;;  %vm828_vm11 = vcmp.eq.s32.totalorder %v2395_v26, %v2284_v45 }
 0x118   : > { %v1626_v1 = vsel %vm718_vm0, 1.0, %v2008_v50  ;;  %vm609_vm1 = vcmp.eq.s32.totalorder %v577_v53, %v2284_v45  ;;  %v1640_v26 = vsel %vm828_vm11, 1.0, %v2008_v50 }
 0x119   : > { %v2460_v63 = vadd.f32 %v1626_v1, %v654_v40  ;;  %v1613_v13 = vsel %vm609_vm1, 1.0, %v2008_v50  ;;  %vm717_vm1 = vcmp.eq.s32.totalorder %v2326_v61, %v2284_v45 }
 0x11a   : > { %v657_v5 = vadd.f32 %v1613_v13, %v545_v34  ;;  %v689_v54 = vpop.permute.xlu0 %688  ;;  %v1612_v34 = vsel %vm608_vm14, 1.0, %v2008_v50  ;;  %v1625_v61 = vsel %vm717_vm1, 1.0, %v2008_v50  ;;  %vm829_vm14 = vcmp.eq.s32.totalorder %v2400_v31, %v2284_v45 }
 0x11b   : > { %vm721_vm2 = vcmp.eq.s32.totalorder %v689_v54, %v2284_v45  ;;  %1894 = vset.pattern.permute.xlu1 %v2978_v9  ;;  %v1577_v54 = vsel %vm381_vm3, 1.0, %v2008_v50  ;;  %vm605_vm3 = vcmp.eq.s32.totalorder %v2397_v27, %v2284_v45 }
 0x11c   : > { %v1629_v21 = vsel %vm721_vm2, 1.0, %v2008_v50  ;;  %803 = vperm.xlu1 %1894, %v2263_v38   ;;  %v2467_v11 = vpop.permute.xlu1 %1012  ;;  %v429_v40 = vadd.f32 %v1577_v54, %v1561_v28  ;;  %v1622_v54 = vsel %vm714_vm15, 1.0, %v2008_v50  ;;  %vm938_vm15 = vcmp.eq.s32.totalorder %v2414_v23, %v2284_v45 }
 0x11d   : > { %v2469_v0 = vadd.f32 %v1629_v21, %v657_v5  ;;  %v1564_v5 = vsel %vm272_vm5, 1.0, %v2008_v50  ;;  %vm826_vm5 = vcmp.eq.s32.totalorder %v2360_v42, %v2284_v45  ;;  %v1639_v42 = vsel %vm827_vm10, 1.0, %v2008_v50 }
 0x11e   : > { %v2471_v22 = vpop.permute.xlu0 %694  ;;  %v541_v46 = vadd.f32 %v1593_v41, %v429_v40  ;;  %v432_v53 = vadd.f32 %v1580_v24, %v1564_v5  ;;  %v2980_v23 = vmov 2  }
 0x11f   : > { %vm723_vm1 = vcmp.eq.s32.totalorder %v2471_v22, %v2284_v45 }
 0x120   : > { %806 = vperm.xlu1 %1894, %v2123_v8   ;;  %v2979_v8 = vmov 0   ;;  %v544_v56 = vadd.f32 %v1596_v44, %v432_v53  ;;  %v1623_v44 = vsel %vm715_vm7, 1.0, %v2008_v50 }
 0x121   : > { %v2476_v1 = vpop.permute.xlu1 %682 }
 0x122   : > { %v2480_v13 = vpop.permute.xlu0 %703  ;;  %v656_v40 = vadd.f32 %v1612_v34, %v544_v56  ;;  %v1654_v56 = vsel %vm938_vm15, 1.0, %v2008_v50 }
 0x124   : > { %1896 = vset.pattern.permute.xlu1 %v2979_v8 }
 0x125   : > { %264 = vperm.xlu1 %1896, %v2164_v18   ;;  %v686_v30 = vpop.permute.xlu1 %685 }
 0x126   : > { %v2499_v32 = vpop.permute.xlu0 %712  ;;  %vm720_vm0 = vcmp.eq.s32.totalorder %v686_v30, %v2284_v45 }
 0x127   : > { %v1628_v8 = vsel %vm720_vm0, 1.0, %v2008_v50  ;;  %vm1051_vm0 = vcmp.eq.s32.totalorder %v2422_v7, %v2284_v45 }
 0x128   : > { %v768_v41 = vadd.f32 %v1628_v8, %v656_v40  ;;  %v1631_v8 = vsel %vm723_vm1, 1.0, %v2008_v50 }
 0x129   : > { %1897 = vset.pattern.permute.xlu1 %v2977_v47  ;;  %v652_v47 = vadd.f32 %v1608_v19, %v540_v60  ;;  %v1638_v19 = vsel %vm826_vm5, 1.0, %v2008_v50  ;;  %vm1053_vm5 = vcmp.eq.s32.totalorder %v2467_v11, %v2284_v45 }
 0x12a   : > { %373 = vperm.xlu1 %1897, %v2139_v12   ;;  %v244_v49 = vpop.permute.xlu1 %243  ;;  %v1673_v11 = vsel %vm1053_vm5, 1.0, %v2008_v50  ;;  %vm607_vm5 = vcmp.eq.s32.totalorder %v2435_v36, %v2284_v45 }
 0x12b   : > { %v792_v21 = vpop.permute.xlu0 %791  ;;  %v2533_v30 = vadd.f32 %v1624_v59, %v652_v47  ;;  %vm274_vm4 = vcmp.eq.s32.totalorder %v244_v49, %v2284_v45  ;;  %v762_v59 = vadd.f32 %v1622_v54, %v2391_v25  ;;  %v1641_v47 = vsel %vm829_vm14, 1.0, %v2008_v50 }
 0x12c   : > { %vm830_vm2 = vcmp.eq.s32.totalorder %v792_v21, %v2284_v45  ;;  %v1566_v24 = vsel %vm274_vm4, 1.0, %v2008_v50  ;;  %v1599_v21 = vsel %vm499_vm6, 1.0, %v2008_v50  ;;  %v1671_v54 = vsel %vm1051_vm0, 1.0, %v2008_v50 }
 0x12d   : > { %v1642_v28 = vsel %vm830_vm2, 1.0, %v2008_v50  ;;  %v874_v31 = vadd.f32 %v1638_v19, %v762_v59  ;;  %vm1050_vm2 = vcmp.eq.s32.totalorder %v2442_v16, %v2284_v45  ;;  %vm1052_vm6 = vcmp.eq.s32.totalorder %v2426_v6, %v2284_v45 }
 0x12e   : > { %v2537_v5 = vadd.f32 %v1642_v28, %v2460_v63  ;;  %1899 = vset.pattern.permute.xlu1 %v2978_v9  ;;  %v1609_v63 = vsel %vm605_vm3, 1.0, %v2008_v50  ;;  %vm941_vm3 = vcmp.eq.s32.totalorder %v2429_v14, %v2284_v45  ;;  %v1670_v28 = vsel %vm1050_vm2, 1.0, %v2008_v50 }
 0x12f   : > { %809 = vperm.xlu1 %1899, %v2178_v20   ;;  %v356_v27 = vpop.permute.xlu1 %355  ;;  %v798_v37 = vpop.permute.xlu0 %797  ;;  %v651_v20 = vadd.f32 %v1607_v55, %v2353_v29  ;;  %v653_v34 = vadd.f32 %v1609_v63, %v541_v46  ;;  %v1615_v46 = vsel %vm611_vm12, 1.0, %v2008_v50  ;;  %v876_v63 = vadd.f32 %v1640_v26, %v2533_v30 }
 0x130   : > { %vm386_vm8 = vcmp.eq.s32.totalorder %v356_v27, %v2284_v45  ;;  %vm832_vm9 = vcmp.eq.s32.totalorder %v798_v37, %v2284_v45  ;;  %v1657_v27 = vsel %vm941_vm3, 1.0, %v2008_v50  ;;  %v1672_v19 = vsel %vm1052_vm6, 1.0, %v2008_v50 }
 0x131   : > { %v1582_v60 = vsel %vm386_vm8, 1.0, %v2008_v50  ;;  %v1644_v15 = vsel %vm832_vm9, 1.0, %v2008_v50  ;;  %v763_v25 = vadd.f32 %v1623_v44, %v651_v20  ;;  %v765_v58 = vadd.f32 %v1625_v61, %v653_v34 }
 0x132   : > { %v2558_v53 = vadd.f32 %v1582_v60, %v1566_v24  ;;  %v2560_v49 = vadd.f32 %v1644_v15, %v768_v41  ;;  %v986_v61 = vadd.f32 %v1654_v56, %v874_v31  ;;  %v2981_v24 = vmov 6  }
 0x133   : > { %812 = vperm.xlu1 %1899, %v2129_v10   ;;  %v359_v29 = vpop.permute.xlu1 %358  ;;  %v2570_v55 = vpop.permute.xlu0 %818  ;;  %v875_v16 = vadd.f32 %v1639_v42, %v763_v25  ;;  %v877_v41 = vadd.f32 %v1641_v47, %v765_v58  ;;  %vm1056_vm8 = vcmp.eq.s32.totalorder %v2432_v33, %v2284_v45  ;;  %vm500_vm9 = vcmp.eq.s32.totalorder %v2371_v52, %v2284_v45 }
 0x134   : > { %vm387_vm13 = vcmp.eq.s32.totalorder %v359_v29, %v2284_v45  ;;  %v1098_v44 = vadd.f32 %v1670_v28, %v986_v61  ;;  %vm277_vm12 = vcmp.eq.s32.totalorder %v2265_v39, %v2284_v45  ;;  %v1676_v33 = vsel %vm1056_vm8, 1.0, %v2008_v50 }
 0x135   : > { %v1583_v48 = vsel %vm387_vm13, 1.0, %v2008_v50  ;;  %v989_v59 = vadd.f32 %v1657_v27, %v877_v41  ;;  %vm612_vm13 = vcmp.eq.s32.totalorder %v2411_v4, %v2284_v45  ;;  %v1600_v39 = vsel %vm500_vm9, 1.0, %v2008_v50 }
 0x136   : > { %v435_v51 = vadd.f32 %v1583_v48, %v2513_v35  ;;  %v1569_v4 = vsel %vm277_vm12, 1.0, %v2008_v50  ;;  %v2983_v61 = vmov 7   ;;  %vm383_vm2 = vcmp.eq.s32.totalorder %v2312_v57, %v2284_v45 }
 0x137   : > { %1901 = vset.pattern.permute.xlu1 %v2980_v23  ;;  %vm271_vm3 = vcmp.eq.s32.totalorder %v2339_v2, %v2284_v45  ;;  %vm719_vm6 = vcmp.eq.s32.totalorder %v2476_v1, %v2284_v45 }
 0x138   : > { %v547_v7 = vadd.f32 %v1599_v21, %v435_v51  ;;  %482 = vperm.xlu1 %1901, %v2159_v17   ;;  %v2603_v22 = vpop.permute.xlu1 %794  ;;  %v895_v35 = vpop.permute.xlu0 %894  ;;  %v1101_v21 = vadd.f32 %v1673_v11, %v989_v59  ;;  %v2984_v11 = vmov 4  }
 0x139   : > { %vm939_vm4 = vcmp.eq.s32.totalorder %v895_v35, %v2284_v45  ;;  %vm831_vm8 = vcmp.eq.s32.totalorder %v2603_v22, %v2284_v45  ;;  %v1926_v22 = vld [vmem:[%s2952_s2 + $0x38] sm:$0xff]  }
 0x13a   : > { %v1655_v14 = vsel %vm939_vm4, 1.0, %v2008_v50  ;;  %v659_v40 = vadd.f32 %v1615_v46, %v547_v7  ;;  %vm495_vm4 = vcmp.eq.s32.totalorder %v2408_v3, %v2284_v45  ;;  %v1611_v3 = vsel %vm607_vm5, 1.0, %v2008_v50  ;;  %1773 = vmatprep.subr.bf16.mxu1 %v1926_v22 }
 0x13b   : > { %v987_v37 = vadd.f32 %v1655_v14, %v875_v16  ;;  %v2982_v16 = vmov 3   ;;  %v1595_v57 = vsel %vm495_vm4, 1.0, %v2008_v50  ;;  %1774 = vmatpush3.bf16.msra.mxu1 %v1926_v22  ;;  %vm278_vm5 = vcmp.eq.s32.totalorder %v2276_v43, %v2284_v45 }
 0x13c   : > { %1902 = vset.pattern.permute.xlu1 %v2981_v24  ;;  %v898_v60 = vpop.permute.xlu0 %897  ;;  %v2617_v15 = vadd.f32 %v1631_v8, %v659_v40 }
 0x13d   : > { %vm940_vm7 = vcmp.eq.s32.totalorder %v898_v60, %v2284_v45  ;;  %915 = vperm.xlu1 %1902, %v2263_v38   ;;  %v250_v20 = vpop.permute.xlu1 %249  ;;  %v1099_v6 = vadd.f32 %v1671_v54, %v987_v37 }
 0x13e   : > { %v1656_v30 = vsel %vm940_vm7, 1.0, %v2008_v50  ;;  %vm276_vm10 = vcmp.eq.s32.totalorder %v250_v20, %v2284_v45 }
 0x13f   : > { %v988_v34 = vadd.f32 %v1656_v30, %v876_v63  ;;  %v1114_v29 = vpack.c.bf16 %v1099_v6, %v1098_v44  ;;  %v1568_v46 = vsel %vm276_vm10, 1.0, %v2008_v50  ;;  %v1627_v44 = vsel %vm719_vm6, 1.0, %v2008_v50 }
 0x140   : > { %v910_v42 = vpop.permute.xlu0 %909 }
 0x141   : > { %v1100_v25 = vadd.f32 %v1672_v19, %v988_v34  ;;  %vm944_vm11 = vcmp.eq.s32.totalorder %v910_v42, %v2284_v45  ;;  %1903 = vset.pattern.permute.xlu1 %v2980_v23  ;;  %1757 = vmatprep.mubr.bf16.mxu0 %v1114_v29 }
 0x142   : > { %v1660_v48 = vsel %vm944_vm11, 1.0, %v2008_v50  ;;  %485 = vperm.xlu1 %1903, %v2139_v12   ;;  %v362_v26 = vpop.permute.xlu1 %361 }
 0x143   : > { %v992_v51 = vadd.f32 %v1660_v48, %v2560_v49  ;;  %vm388_vm14 = vcmp.eq.s32.totalorder %v362_v26, %v2284_v45  ;;  %v1115_v58 = vpack.c.bf16 %v1101_v21, %v1100_v25  ;;  %v1616_v49 = vsel %vm612_vm13, 1.0, %v2008_v50  ;;  %v1934_v21 = vld [vmem:[%s2091_s5 + $0x60] sm:$0xff]  ;;  %v1927_v25 = vld [vmem:[%s2952_s2 + $0x30] sm:$0xff]  }
 0x144   : > { %v1584_v31 = vsel %vm388_vm14, 1.0, %v2008_v50  ;;  %1775 = vmatprep.subr.bf16.mxu1 %v1927_v25 }
 0x145   : > { %v2646_v23 = vadd.f32 %v1676_v33, %v992_v51  ;;  %v436_v47 = vadd.f32 %v1584_v31, %v1568_v46  ;;  %1758 = vmatmul.mubr.bf16.vlgmr.msra.gmra.mxu0 %v1115_v58  ;;  %1776 = vmatpush3.bf16.msra.mxu1 %v1927_v25  ;;  %v1935_v58 = vld [vmem:[%s2091_s5 + $0x70] sm:$0xff] }
 0x146   : > { %488 = vperm.xlu1 %1903, %v2164_v18   ;;  %v365_v56 = vpop.permute.xlu1 %364 }
 0x147   : > { %v548_v7 = vadd.f32 %v1600_v39, %v436_v47  ;;  %vm389_vm15 = vcmp.eq.s32.totalorder %v365_v56, %v2284_v45  ;;  %v1928_v39 = vld [vmem:[%s2952_s2 + $0x28] sm:$0xff]   ;;  %v1936_v56 = vld [vmem:[%s2091_s5 + $0x78] sm:$0xff] }
 0x148   : > { %v1585_v52 = vsel %vm389_vm15, 1.0, %v2008_v50  ;;  %1777 = vmatprep.subr.bf16.mxu1 %v1928_v39 }
 0x149   : > { %v437_v35 = vadd.f32 %v1585_v52, %v1569_v4  ;;  %v2653_v54 = vadd.f32 %v1616_v49, %v548_v7  ;;  %1778 = vmatpush3.bf16.msra.mxu1 %v1928_v39  ;;  %v1929_v7 = vld [vmem:[%s2952_s2 + $0x20] sm:$0xff]  }
 0x14a   : > { %1904 = vset.pattern.permute.xlu1 %v2981_v24  ;;  %1779 = vmatprep.subr.bf16.mxu1 %v1929_v7  ;;  %v2989_v39 = vld [vmem:[#allocation5_spill] sm:$0xff] }
 0x14b   : > { %924 = vperm.xlu1 %1904, %v2129_v10   ;;  %v2657_v8 = vpop.permute.xlu1 %800 }
 0x14c   : > { %vm833_vm13 = vcmp.eq.s32.totalorder %v2657_v8, %v2284_v45 }
 0x14d   : > { %v1645_v31 = vsel %vm833_vm13, 1.0, %v2008_v50  ;;  %1780 = vmatpush3.bf16.msra.mxu1 %v1929_v7 }
 0x14e   : > { %v881_v52 = vadd.f32 %v1645_v31, %v2469_v0 }
 0x14f   : > { %1906 = vset.pattern.permute.xlu1 %v2982_v16 }
 0x150   : > { %594 = vperm.xlu1 %1906, %v2159_v17   ;;  %v468_v28 = vpop.permute.xlu1 %467 }
 0x151   : > { %vm498_vm0 = vcmp.eq.s32.totalorder %v468_v28, %v2284_v45  ;;  %v1930_v28 = vld [vmem:[%s2952_s2 + $0x18] sm:$0xff]  }
 0x152   : > { %v1598_v14 = vsel %vm498_vm0, 1.0, %v2008_v50  ;;  %1781 = vmatprep.subr.bf16.mxu1 %v1930_v28 }
 0x153   : > { %v546_v40 = vadd.f32 %v1598_v14, %v2558_v53  ;;  %v1563_v53 = vsel %vm271_vm3, 1.0, %v2008_v50  ;;  %1782 = vmatpush3.bf16.msra.mxu1 %v1930_v28  ;;  %vm391_vm3 = vcmp.eq.s32.totalorder %v2328_v62, %v2284_v45  ;;  %v1570_v62 = vsel %vm278_vm5, 1.0, %v2008_v50 }
 0x154   : > { %1907 = vset.pattern.permute.xlu1 %v2983_v61 }
 0x155   : > { %1027 = vperm.xlu1 %1907, %v2263_v38   ;;  %v904_v27 = vpop.permute.xlu1 %903 }
 0x156   : > { %vm942_vm9 = vcmp.eq.s32.totalorder %v904_v27, %v2284_v45 }
 0x157   : > { %v1658_v30 = vsel %vm942_vm9, 1.0, %v2008_v50  ;;  %vm726_vm9 = vcmp.eq.s32.totalorder %v2480_v13, %v2284_v45 }
 0x158   : > { %v990_v33 = vadd.f32 %v1658_v30, %v2537_v5  ;;  %v1634_v22 = vsel %vm726_vm9, 1.0, %v2008_v50 }
 0x159   : > { %1908 = vset.pattern.permute.xlu1 %v2982_v16  ;;  %v907_v37 = vpop.permute.xlu1 %906 }
 0x15a   : > { %597 = vperm.xlu1 %1908, %v2139_v12   ;;  %vm943_vm10 = vcmp.eq.s32.totalorder %v907_v37, %v2284_v45  ;;  %v1931_v37 = vld [vmem:[%s2952_s2 + $0x10] sm:$0xff]  }
 0x15b   : > { %v1659_v34 = vsel %vm943_vm10, 1.0, %v2008_v50  ;;  %1783 = vmatprep.subr.bf16.mxu1 %v1931_v37 }
 0x15c   : > { %1784 = vmatpush3.bf16.msra.mxu1 %v1931_v37 }
 0x15e   : > { %600 = vperm.xlu1 %1908, %v2164_v18   ;;  %v477_v63 = vpop.permute.xlu1 %476  ;;  %v1579_v18 = vsel %vm383_vm2, 1.0, %v2008_v50 }
 0x15f   : > { %vm501_vm1 = vcmp.eq.s32.totalorder %v477_v63, %v2284_v45  ;;  %v431_v2 = vadd.f32 %v1579_v18, %v1563_v53  ;;  %v1932_v63 = vld [vmem:[%s2952_s2 + $0x8] sm:$0xff]  }
 0x160   : > { %v1601_v41 = vsel %vm501_vm1, 1.0, %v2008_v50  ;;  %1785 = vmatprep.subr.bf16.mxu1 %v1932_v63 }
 0x161   : > { %v2671_v60 = vadd.f32 %v1601_v41, %v437_v35  ;;  %v543_v20 = vadd.f32 %v1595_v57, %v431_v2  ;;  %1786 = vmatpush3.bf16.msra.mxu1 %v1932_v63 }
 0x162   : > { %1910 = vset.pattern.permute.xlu1 %v2983_v61 }
 0x163   : > { %1036 = vperm.xlu1 %1910, %v2129_v10   ;;  %v913_v38 = vpop.permute.xlu1 %912  ;;  %v655_v19 = vadd.f32 %v1611_v3, %v543_v20  ;;  %v2986_v3 = vld [vmem:[#allocation8_spill] sm:$0xff] }
 0x164   : > { %vm945_vm14 = vcmp.eq.s32.totalorder %v913_v38, %v2284_v45  ;;  %v1933_v38 = vld [vmem:[%s2952_s2] sm:$0xff]  }
 0x165   : > { %v767_v59 = vadd.f32 %v1627_v44, %v655_v19  ;;  %v1661_v4 = vsel %vm945_vm14, 1.0, %v2008_v50  ;;  %1787 = vmatprep.subr.bf16.mxu1 %v1933_v38 }
 0x166   : > { %v993_v8 = vadd.f32 %v1661_v4, %v881_v52  ;;  %1788 = vmatpush3.bf16.msra.mxu1 %v1933_v38 }
 0x167   : > { %1911 = vset.pattern.permute.xlu1 %v2984_v11 }
 0x168   : > { %706 = vperm.xlu1 %1911, %v2159_v17   ;;  %v580_v10 = vpop.permute.xlu1 %579  ;;  %v1643_v17 = vsel %vm831_vm8, 1.0, %v2008_v50 }
 0x169   : > { %vm610_vm7 = vcmp.eq.s32.totalorder %v580_v10, %v2284_v45  ;;  %v879_v29 = vadd.f32 %v1643_v17, %v767_v59  ;;  %v2985_v10 = vld [vmem:[#allocation7_spill] sm:$0xff] }
 0x16a   : > { %v1614_v36 = vsel %vm610_vm7, 1.0, %v2008_v50  ;;  %vm502_vm6 = vcmp.eq.s32.totalorder %v2985_v10, %v2284_v45  ;;  %vm614_vm7 = vcmp.eq.s32.totalorder %v2986_v3, %v2284_v45 }
 0x16b   : > { %v2696_v6 = vadd.f32 %v1614_v36, %v546_v40  ;;  %v991_v48 = vadd.f32 %v1659_v34, %v879_v29  ;;  %v1937_v40 = vld [vmem:[%s2091_s5 + $0x68] sm:$0xff]  ;;  %v1602_v44 = vsel %vm502_vm6, 1.0, %v2008_v50  ;;  %v1618_v43 = vsel %vm614_vm7, 1.0, %v2008_v50  ;;  %v2987_v29 = vld [vmem:[#allocation9_spill] sm:$0xff] }
 0x16c   : > { %709 = vperm.xlu1 %1911, %v2139_v12  }
 0x16d   : > { %v1016_v1 = vpop.permute.xlu1 %1015 }
 0x16e   : > { %vm1054_vm11 = vcmp.eq.s32.totalorder %v1016_v1, %v2284_v45  ;;  %v919_v1 = vpop.permute.xlu0 %918 }
 0x16f   : > { %v1674_v12 = vsel %vm1054_vm11, 1.0, %v2008_v50  ;;  %vm947_vm10 = vcmp.eq.s32.totalorder %v919_v1, %v2284_v45  ;;  %vm1059_vm11 = vcmp.eq.s32.totalorder %v2987_v29, %v2284_v45 }
 0x170   : > { %1913 = vset.pattern.permute.xlu1 %v2978_v9  ;;  %v1102_v9 = vadd.f32 %v1674_v12, %v990_v33  ;;  %v1663_v12 = vsel %vm947_vm10, 1.0, %v2008_v50  ;;  %v1679_v25 = vsel %vm1059_vm11, 1.0, %v2008_v50 }
 0x171   : > { %815 = vperm.xlu1 %1913, %v1934_v21   ;;  %v1019_v42 = vpop.permute.xlu1 %1018 }
 0x172   : > { %vm1055_vm12 = vcmp.eq.s32.totalorder %v1019_v42, %v2284_v45  ;;  %v2988_v42 = vld [vmem:[#allocation6_spill] sm:$0xff] }
 0x173   : > { %v1675_v26 = vsel %vm1055_vm12, 1.0, %v2008_v50  ;;  %vm393_vm13 = vcmp.eq.s32.totalorder %v2988_v42, %v2284_v45 }
 0x174   : > { %v1103_v51 = vadd.f32 %v1675_v26, %v991_v48  ;;  %v1589_v26 = vsel %vm393_vm13, 1.0, %v2008_v50  ;;  %vm729_vm13 = vcmp.eq.s32.totalorder %v2499_v32, %v2284_v45 }
 0x175   : > { %821 = vperm.xlu1 %1913, %v1935_v58  }
 0x176   : > { %v589_v5 = vpop.permute.xlu1 %588  ;;  %v1116_v46 = vpack.c.bf16 %v1103_v51, %v1102_v9 }
 0x177   : > { %vm613_vm15 = vcmp.eq.s32.totalorder %v589_v5, %v2284_v45 }
 0x178   : > { %v1617_v47 = vsel %vm613_vm15, 1.0, %v2008_v50  ;;  %1761 = vmatprep.mubr.bf16.mxu0 %v1116_v46  ;;  %vm280_vm15 = vcmp.eq.s32.totalorder %v2989_v39, %v2284_v45 }
 0x179   : > { %v661_v49 = vadd.f32 %v1617_v47, %v2671_v60  ;;  %824 = vperm.xlu1 %1913, %v1936_v56   ;;  %v1572_v46 = vsel %vm280_vm15, 1.0, %v2008_v50 }
 0x17b   : > { %v1025_v35 = vpop.permute.xlu1 %1024 }
 0x17c   : > { %vm1057_vm0 = vcmp.eq.s32.totalorder %v1025_v35, %v2284_v45 }
 0x17d   : > { %v1677_v16 = vsel %vm1057_vm0, 1.0, %v2008_v50  ;;  %1915 = vset.pattern.permute.xlu1 %v2981_v24 }
 0x17e   : > { %v1105_v14 = vadd.f32 %v1677_v16, %v993_v8  ;;  %930 = vperm.xlu1 %1915, %v1937_v40  }
 0x180   : > { %v2741_v27 = vpop.permute.xlu1 %691  ;;  %v1117_v0 = vpack.c.bf16 %v1105_v14, %v2646_v23 }
 0x181   : > { %vm722_vm6 = vcmp.eq.s32.totalorder %v2741_v27, %v2284_v45 }
 0x182   : > { %933 = vperm.xlu1 %1915, %v1935_v58   ;;  %1762 = vmatmul.mubr.bf16.gmra.mxu0 %v1117_v0  ;;  %v1630_v38 = vsel %vm722_vm6, 1.0, %v2008_v50 }
 0x184   : > { %v698_v24 = vpop.permute.xlu1 %697 }
 0x185   : > { %vm724_vm1 = vcmp.eq.s32.totalorder %v698_v24, %v2284_v45 }
 0x186   : > { %v1632_v41 = vsel %vm724_vm1, 1.0, %v2008_v50  ;;  %1916 = vset.pattern.permute.xlu1 %v2983_v61  ;;  %v1587_v61 = vsel %vm391_vm3, 1.0, %v2008_v50 }
 0x187   : > { %v2754_v23 = vadd.f32 %v1632_v41, %v2653_v54  ;;  %1039 = vperm.xlu1 %1916, %v1934_v21  }
 0x188   : > { %v701_v60 = vpop.permute.xlu1 %700 }
 0x189   : > { %vm725_vm2 = vcmp.eq.s32.totalorder %v701_v60, %v2284_v45 }
 0x18a   : > { %v1633_v18 = vsel %vm725_vm2, 1.0, %v2008_v50 }
 0x18b   : > { %v2761_v53 = vadd.f32 %v1633_v18, %v661_v49  ;;  %1045 = vperm.xlu1 %1916, %v1935_v58   ;;  %v2990_v49 = vld [vmem:[#allocation10_spill] sm:$0xff] }
 0x18c   : > { %vm1060_vm2 = vcmp.eq.s32.totalorder %v2990_v49, %v2284_v45 }
 0x18d   : > { %v259_v54 = vpop.permute.xlu1 %258  ;;  %v1680_v35 = vsel %vm1060_vm2, 1.0, %v2008_v50 }
 0x18e   : > { %vm279_vm4 = vcmp.eq.s32.totalorder %v259_v54, %v2284_v45 }
 0x18f   : > { %v1571_v57 = vsel %vm279_vm4, 1.0, %v2008_v50  ;;  %1048 = vperm.xlu1 %1916, %v1936_v56  }
 0x190   : > { %v439_v11 = vadd.f32 %v1587_v61, %v1571_v57  ;;  %v770_v61 = vadd.f32 %v1630_v38, %v2696_v6 }
 0x192   : > { %v368_v2 = vpop.permute.xlu1 %367 }
 0x193   : > { %vm390_vm8 = vcmp.eq.s32.totalorder %v368_v2, %v2284_v45 }
 0x194   : > { %v1586_v20 = vsel %vm390_vm8, 1.0, %v2008_v50 }
 0x195   : > { %v438_v36 = vadd.f32 %v1586_v20, %v1570_v62 }
 0x197   : > { %v550_v19 = vadd.f32 %v1602_v44, %v438_v36  ;;  %v804_v17 = vpop.permute.xlu1 %803 }
 0x198   : > { %vm834_vm7 = vcmp.eq.s32.totalorder %v804_v17, %v2284_v45 }
 0x199   : > { %v662_v59 = vadd.f32 %v1618_v43, %v550_v19  ;;  %v1646_v54 = vsel %vm834_vm7, 1.0, %v2008_v50 }
 0x19b   : > { %v807_v30 = vpop.permute.xlu1 %806  ;;  %v2783_v34 = vadd.f32 %v1634_v22, %v662_v59  ;;  %v1637_v22 = vsel %vm729_vm13, 1.0, %v2008_v50 }
 0x19c   : > { %vm835_vm12 = vcmp.eq.s32.totalorder %v807_v30, %v2284_v45 }
 0x19d   : > { %v1647_v13 = vsel %vm835_vm12, 1.0, %v2008_v50 }
 0x19e   : > { %v883_v21 = vadd.f32 %v1647_v13, %v2617_v15  ;;  %v922_v15 = vpop.permute.xlu0 %921 }
 0x19f   : > { %vm948_vm1 = vcmp.eq.s32.totalorder %v922_v15, %v2284_v45 }
 0x1a0   : > { %v995_v33 = vadd.f32 %v1663_v12, %v883_v21  ;;  %v265_v48 = vpop.permute.xlu1 %264  ;;  %v1664_v7 = vsel %vm948_vm1, 1.0, %v2008_v50  ;;  %vm839_vm1 = vcmp.eq.s32.totalorder %v2570_v55, %v2284_v45 }
 0x1a1   : > { %vm281_vm14 = vcmp.eq.s32.totalorder %v265_v48, %v2284_v45 }
 0x1a2   : > { %v1107_v9 = vadd.f32 %v1679_v25, %v995_v33  ;;  %v1573_v51 = vsel %vm281_vm14, 1.0, %v2008_v50 }
 0x1a3   : > { %v441_v58 = vadd.f32 %v1589_v26, %v1573_v51  ;;  %v1651_v26 = vsel %vm839_vm1, 1.0, %v2008_v50 }
 0x1a5   : > { %v374_v5 = vpop.permute.xlu1 %373 }
 0x1a6   : > { %vm392_vm0 = vcmp.eq.s32.totalorder %v374_v5, %v2284_v45  ;;  %v928_v5 = vpop.permute.xlu0 %927 }
 0x1a7   : > { %v1588_v31 = vsel %vm392_vm0, 1.0, %v2008_v50  ;;  %vm950_vm6 = vcmp.eq.s32.totalorder %v928_v5, %v2284_v45 }
 0x1a8   : > { %v440_v47 = vadd.f32 %v1588_v31, %v1572_v46 }
 0x1aa   : > { %v810_v4 = vpop.permute.xlu1 %809  ;;  %v937_v46 = vpop.permute.xlu0 %936 }
 0x1ab   : > { %vm836_vm3 = vcmp.eq.s32.totalorder %v810_v4, %v2284_v45  ;;  %vm953_vm13 = vcmp.eq.s32.totalorder %v937_v46, %v2284_v45 }
 0x1ac   : > { %v1648_v56 = vsel %vm836_vm3, 1.0, %v2008_v50 }
 0x1ad   : > { %v884_v52 = vadd.f32 %v1648_v56, %v2754_v23 }
 0x1ae   : > { %v813_v8 = vpop.permute.xlu1 %812 }
 0x1af   : > { %v996_v16 = vadd.f32 %v1664_v7, %v884_v52  ;;  %vm837_vm11 = vcmp.eq.s32.totalorder %v813_v8, %v2284_v45 }
 0x1b0   : > { %v1649_v44 = vsel %vm837_vm11, 1.0, %v2008_v50 }
 0x1b1   : > { %v1108_v28 = vadd.f32 %v1680_v35, %v996_v16  ;;  %v885_v59 = vadd.f32 %v1649_v44, %v2761_v53  ;;  %v1666_v35 = vsel %vm950_vm6, 1.0, %v2008_v50 }
 0x1b3   : > { %v483_v14 = vpop.permute.xlu1 %482 }
 0x1b4   : > { %vm503_vm4 = vcmp.eq.s32.totalorder %v483_v14, %v2284_v45 }
 0x1b5   : > { %v1603_v40 = vsel %vm503_vm4, 1.0, %v2008_v50 }
 0x1b6   : > { %v551_v0 = vadd.f32 %v1603_v40, %v439_v11  ;;  %v882_v11 = vadd.f32 %v1646_v54, %v770_v61 }
 0x1b8   : > { %v916_v37 = vpop.permute.xlu1 %915 }
 0x1b9   : > { %vm946_vm8 = vcmp.eq.s32.totalorder %v916_v37, %v2284_v45 }
 0x1ba   : > { %v1662_v57 = vsel %vm946_vm8, 1.0, %v2008_v50 }
 0x1bb   : > { %v994_v10 = vadd.f32 %v1662_v57, %v882_v11 }
 0x1bd   : > { %v486_v24 = vpop.permute.xlu1 %485 }
 0x1be   : > { %vm504_vm5 = vcmp.eq.s32.totalorder %v486_v24, %v2284_v45 }
 0x1bf   : > { %v1604_v63 = vsel %vm504_vm5, 1.0, %v2008_v50 }
 0x1c0   : > { %v2814_v41 = vadd.f32 %v1604_v63, %v440_v47  ;;  %v1043_v47 = vpop.permute.xlu0 %1042 }
 0x1c1   : > { %v489_v23 = vpop.permute.xlu1 %488  ;;  %vm1063_vm7 = vcmp.eq.s32.totalorder %v1043_v47, %v2284_v45 }
 0x1c2   : > { %vm505_vm10 = vcmp.eq.s32.totalorder %v489_v23, %v2284_v45  ;;  %v1683_v8 = vsel %vm1063_vm7, 1.0, %v2008_v50 }
 0x1c3   : > { %v1605_v36 = vsel %vm505_vm10, 1.0, %v2008_v50 }
 0x1c4   : > { %v553_v43 = vadd.f32 %v1605_v36, %v441_v58 }
 0x1c6   : > { %v925_v60 = vpop.permute.xlu1 %924 }
 0x1c7   : > { %vm949_vm12 = vcmp.eq.s32.totalorder %v925_v60, %v2284_v45 }
 0x1c8   : > { %v1665_v17 = vsel %vm949_vm12, 1.0, %v2008_v50 }
 0x1c9   : > { %v997_v13 = vadd.f32 %v1665_v17, %v885_v59 }
 0x1cb   : > { %v595_v18 = vpop.permute.xlu1 %594 }
 0x1cc   : > { %vm615_vm15 = vcmp.eq.s32.totalorder %v595_v18, %v2284_v45 }
 0x1cd   : > { %v1619_v12 = vsel %vm615_vm15, 1.0, %v2008_v50 }
 0x1ce   : > { %v663_v33 = vadd.f32 %v1619_v12, %v551_v0 }
 0x1d0   : > { %v1028_v2 = vpop.permute.xlu1 %1027 }
 0x1d1   : > { %vm1058_vm9 = vcmp.eq.s32.totalorder %v1028_v2, %v2284_v45  ;;  %v1669_v2 = vsel %vm953_vm13, 1.0, %v2008_v50 }
 0x1d2   : > { %v1678_v27 = vsel %vm1058_vm9, 1.0, %v2008_v50 }
 0x1d3   : > { %v1106_v3 = vadd.f32 %v1678_v27, %v994_v10 }
 0x1d5   : > { %v598_v62 = vpop.permute.xlu1 %597  ;;  %v1118_v20 = vpack.c.bf16 %v1107_v9, %v1106_v3 }
 0x1d6   : > { %vm616_vm5 = vcmp.eq.s32.totalorder %v598_v62, %v2284_v45 }
 0x1d7   : > { %1765 = vmatprep.mubr.bf16.mxu0 %v1118_v20  ;;  %v1620_v52 = vsel %vm616_vm5, 1.0, %v2008_v50 }
 0x1d8   : > { %v664_v0 = vadd.f32 %v1620_v52, %v2814_v41 }
 0x1d9   : > { %v601_v6 = vpop.permute.xlu1 %600 }
 0x1da   : > { %vm617_vm14 = vcmp.eq.s32.totalorder %v601_v6, %v2284_v45 }
 0x1db   : > { %v1621_v19 = vsel %vm617_vm14, 1.0, %v2008_v50 }
 0x1dc   : > { %v665_v1 = vadd.f32 %v1621_v19, %v553_v43 }
 0x1de   : > { %v1037_v30 = vpop.permute.xlu1 %1036  ;;  %v777_v29 = vadd.f32 %v1637_v22, %v665_v1 }
 0x1df   : > { %vm1061_vm0 = vcmp.eq.s32.totalorder %v1037_v30, %v2284_v45 }
 0x1e0   : > { %v1681_v32 = vsel %vm1061_vm0, 1.0, %v2008_v50 }
 0x1e1   : > { %v1109_v21 = vadd.f32 %v1681_v32, %v997_v13 }
 0x1e3   : > { %v707_v42 = vpop.permute.xlu1 %706  ;;  %v1119_v25 = vpack.c.bf16 %v1109_v21, %v1108_v28 }
 0x1e4   : > { %vm727_vm2 = vcmp.eq.s32.totalorder %v707_v42, %v2284_v45 }
 0x1e5   : > { %v1635_v53 = vsel %vm727_vm2, 1.0, %v2008_v50  ;;  %1766 = vmatmul.mubr.bf16.gmra.mxu0 %v1119_v25  ;;  %v1694_v25 = vld [vmem:[%s2953_s3] ss:$0 sm:$0xff] }
 0x1e6   : > { %v775_v48 = vadd.f32 %v1635_v53, %v663_v33 }
 0x1e7   : > { %v710_v9 = vpop.permute.xlu1 %709 }
 0x1e8   : > { %v887_v51 = vadd.f32 %v1651_v26, %v775_v48  ;;  %vm728_vm8 = vcmp.eq.s32.totalorder %v710_v9, %v2284_v45 }
 0x1ec   : > { %v816_v58 = vpop.permute.xlu1 %815 }
 0x1ed   : > { %vm838_vm3 = vcmp.eq.s32.totalorder %v816_v58, %v2284_v45 }
 0x1ee   : > { %v1650_v55 = vsel %vm838_vm3, 1.0, %v2008_v50 }
 0x1ef   : > { %v886_v56 = vadd.f32 %v1650_v55, %v2783_v34  ;;  %v1636_v34 = vsel %vm728_vm8, 1.0, %v2008_v50 }
 0x1f0   : > { %v822_v39 = vpop.permute.xlu1 %821  ;;  %v776_v38 = vadd.f32 %v1636_v34, %v664_v0 }
 0x1f1   : > { %vm840_vm10 = vcmp.eq.s32.totalorder %v822_v39, %v2284_v45  ;;  %v998_v28 = vadd.f32 %v1666_v35, %v886_v56 }
 0x1f2   : > { %v1652_v23 = vsel %vm840_vm10, 1.0, %v2008_v50 }
 0x1f3   : > { %v888_v11 = vadd.f32 %v1652_v23, %v776_v38 }
 0x1f4   : > { %v825_v15 = vpop.permute.xlu1 %824 }
 0x1f5   : > { %vm841_vm9 = vcmp.eq.s32.totalorder %v825_v15, %v2284_v45 }
 0x1f6   : > { %v1653_v14 = vsel %vm841_vm9, 1.0, %v2008_v50 }
 0x1f7   : > { %v889_v18 = vadd.f32 %v1653_v14, %v777_v29 }
 0x1f9   : > { %v931_v31 = vpop.permute.xlu1 %930  ;;  %v1001_v62 = vadd.f32 %v1669_v2, %v889_v18 }
 0x1fa   : > { %vm951_vm4 = vcmp.eq.s32.totalorder %v931_v31, %v2284_v45 }
 0x1fb   : > { %v1667_v49 = vsel %vm951_vm4, 1.0, %v2008_v50 }
 0x1fc   : > { %v999_v7 = vadd.f32 %v1667_v49, %v887_v51 }
 0x1fd   : > { %v934_v4 = vpop.permute.xlu1 %933 }
 0x1fe   : > { %v1111_v37 = vadd.f32 %v1683_v8, %v999_v7  ;;  %vm952_vm12 = vcmp.eq.s32.totalorder %v934_v4, %v2284_v45 }
 0x1ff   : > { %v1668_v57 = vsel %vm952_vm12, 1.0, %v2008_v50 }
 0x200   : > { %v1000_v3 = vadd.f32 %v1668_v57, %v888_v11 }
 0x202   : > { %v1040_v16 = vpop.permute.xlu1 %1039 }
 0x203   : > { %vm1062_vm11 = vcmp.eq.s32.totalorder %v1040_v16, %v2284_v45 }
 0x204   : > { %v1682_v40 = vsel %vm1062_vm11, 1.0, %v2008_v50 }
 0x205   : > { %v1110_v24 = vadd.f32 %v1682_v40, %v998_v28  ;;  %v1759_v63 = vpop.f32.mrf.mxu0 }
 0x206   : > { %v1046_v60 = vpop.permute.xlu1 %1045 }
 0x207   : > { %vm1064_vm14 = vcmp.eq.s32.totalorder %v1046_v60, %v2284_v45  ;;  %v1220_v54 = vpop.f32.mrf.mxu0  ;;  %v1120_v61 = vpack.c.bf16 %v1111_v37, %v1110_v24 }
 0x208   : > { %v1684_v10 = vsel %vm1064_vm14, 1.0, %v2008_v50 }
 0x209   : > { %v1760_v41 = vpop.f32.mrf.mxu0  ;;  %1769 = vmatprep.mubr.bf16.mxu0 %v1120_v61  ;;  %v1112_v44 = vadd.f32 %v1684_v10, %v1000_v3 }
 0x20a   : > { %v1049_v27 = vpop.permute.xlu1 %1048  ;;  %v1284_v43 = vpack.c.bf16 %v1760_v41, %v1759_v63 }
 0x20b   : > { %vm1065_vm15 = vcmp.eq.s32.totalorder %v1049_v27, %v2284_v45  ;;  %v1223_v20 = vpop.f32.mrf.mxu0 }
 0x20c   : > { %v1685_v36 = vsel %vm1065_vm15, 1.0, %v2008_v50  ;;  %v1283_v6 = vpack.c.bf16 %v1223_v20, %v1220_v54 }
 0x20d   : > { %v1113_v19 = vadd.f32 %v1685_v36, %v1001_v62 }
 0x20e   : > { %1789 = vmatprep.mubr.bf16.mxu1 %v1283_v6 }
 0x20f   : > { %1790 = vmatmul.mubr.bf16.vlgmr.msra.gmra.mxu1 %v1284_v43  ;;  %v1121_v17 = vpack.c.bf16 %v1113_v19, %v1112_v44 }
 0x211   : > { %1770 = vmatmul.mubr.bf16.gmra.mxu0 %v1121_v17 }
 0x242   : > { %v1763_v1 = vpop.f32.mrf.mxu0 }
 0x244   : > { %v1236_v22 = vpop.f32.mrf.mxu0 }
 0x246   : > { %v1764_v59 = vpop.f32.mrf.mxu0 }
 0x247   : > { %v1286_v13 = vpack.c.bf16 %v1764_v59, %v1763_v1 }
 0x248   : > { %v1239_v30 = vpop.f32.mrf.mxu0 }
 0x249   : > { %v1285_v29 = vpack.c.bf16 %v1239_v30, %v1236_v22 }
 0x24b   : > { %1793 = vmatprep.mubr.bf16.mxu1 %v1285_v29 }
 0x24c   : > { %1794 = vmatmul.mubr.bf16.gmra.mxu1 %v1286_v13 }
 0x2a5   : > { %v1767_v45 = vpop.f32.mrf.mxu0 }
 0x2a7   : > { %v1252_v50 = vpop.f32.mrf.mxu0 }
 0x2a9   : > { %v1768_v32 = vpop.f32.mrf.mxu0 }
 0x2aa   : > { %v1288_v42 = vpack.c.bf16 %v1768_v32, %v1767_v45 }
 0x2ab   : > { %v1255_v12 = vpop.f32.mrf.mxu0 }
 0x2ac   : > { %v1287_v21 = vpack.c.bf16 %v1255_v12, %v1252_v50 }
 0x2ae   : > { %1797 = vmatprep.mubr.bf16.mxu1 %v1287_v21 }
 0x2af   : > { %1798 = vmatmul.mubr.bf16.gmra.mxu1 %v1288_v42 }
 0x2cf   : > { %v1791_v33 = vpop.f32.mrf.mxu1 }
 0x2d0   : > { %v1405_v53 = vadd.f32 %v1791_v33, %v1694_v25 }
 0x2d1   : > { %v1771_v48 = vpop.f32.mrf.mxu0  ;;  %v1396_v26 = vpop.f32.mrf.mxu1 }
 0x2d2   : > { %1461 = vst [vmem:[%s2881_s9 + $0x10] sm:$0xff] %v1405_v53  ;;  %v1397_v9 = vadd.f32 %v1694_v25, %v1396_v26 }
 0x2d3   : > { %v1268_v51 = vpop.f32.mrf.mxu0  ;;  %v1792_v58 = vpop.f32.mrf.mxu1 }
 0x2d4   : > { %1459 = vst [vmem:[%s2881_s9] sm:$0xff] %v1397_v9  ;;  %v1408_v39 = vadd.f32 %v1792_v58, %v1694_v25 }
 0x2d5   : > { %v1772_v5 = vpop.f32.mrf.mxu0  ;;  %v1399_v15 = vpop.f32.mrf.mxu1 }
 0x2d6   : > { %1462 = vst [vmem:[%s2881_s9 + $0x18] sm:$0xff] %v1408_v39  ;;  %v1400_v46 = vadd.f32 %v1694_v25, %v1399_v15  ;;  %v1290_v47 = vpack.c.bf16 %v1772_v5, %v1771_v48 }
 0x2d7   : > { %v1271_v31 = vpop.f32.mrf.mxu0 }
 0x2d8   : > { %1460 = vst [vmem:[%s2881_s9 + $0x8] sm:$0xff] %v1400_v46  ;;  %v1289_v55 = vpack.c.bf16 %v1271_v31, %v1268_v51 }
 0x2da   : > { %1801 = vmatprep.mubr.bf16.mxu1 %v1289_v55 }
 0x2db   : > { %1802 = vmatmul.mubr.bf16.gmra.mxu1 %v1290_v47 }
 0x30c   : > { %v1795_v4 = vpop.f32.mrf.mxu1 }
 0x30d   : > { %v1421_v49 = vadd.f32 %v1795_v4, %v1694_v25 }
 0x30e   : > { %v1412_v56 = vpop.f32.mrf.mxu1 }
 0x30f   : > { %1465 = vst [vmem:[%s2881_s9 + $0x30] sm:$0xff] %v1421_v49  ;;  %v1413_v7 = vadd.f32 %v1694_v25, %v1412_v56 }
 0x310   : > { %v1796_v52 = vpop.f32.mrf.mxu1 }
 0x311   : > { %1463 = vst [vmem:[%s2881_s9 + $0x20] sm:$0xff] %v1413_v7  ;;  %v1424_v35 = vadd.f32 %v1796_v52, %v1694_v25 }
 0x312   : > { %v1415_v8 = vpop.f32.mrf.mxu1 }
 0x313   : > { %1466 = vst [vmem:[%s2881_s9 + $0x38] sm:$0xff] %v1424_v35  ;;  %v1416_v16 = vadd.f32 %v1694_v25, %v1415_v8 }
 0x315   : > { %1464 = vst [vmem:[%s2881_s9 + $0x28] sm:$0xff] %v1416_v16 }
 0x36f   : > { %v1799_v28 = vpop.f32.mrf.mxu1 }
 0x370   : > { %v1437_v34 = vadd.f32 %v1799_v28, %v1694_v25 }
 0x371   : > { %v1428_v14 = vpop.f32.mrf.mxu1 }
 0x372   : > { %1469 = vst [vmem:[%s2881_s9 + $0x50] sm:$0xff] %v1437_v34  ;;  %v1429_v40 = vadd.f32 %v1694_v25, %v1428_v14 }
 0x373   : > { %v1800_v0 = vpop.f32.mrf.mxu1 }
 0x374   : > { %1467 = vst [vmem:[%s2881_s9 + $0x40] sm:$0xff] %v1429_v40  ;;  %v1440_v37 = vadd.f32 %v1800_v0, %v1694_v25 }
 0x375   : > { %v1431_v24 = vpop.f32.mrf.mxu1 }
 0x376   : > { %1470 = vst [vmem:[%s2881_s9 + $0x58] sm:$0xff] %v1440_v37  ;;  %v1432_v63 = vadd.f32 %v1694_v25, %v1431_v24 }
 0x378   : > { %1468 = vst [vmem:[%s2881_s9 + $0x48] sm:$0xff] %v1432_v63 }
 0x39b   : > { %v1803_v23 = vpop.f32.mrf.mxu1 }
 0x39c   : > { %v1453_v60 = vadd.f32 %v1803_v23, %v1694_v25 }
 0x39d   : > { %v1444_v38 = vpop.f32.mrf.mxu1 }
 0x39e   : > { %1473 = vst [vmem:[%s2881_s9 + $0x70] sm:$0xff] %v1453_v60  ;;  %v1445_v18 = vadd.f32 %v1694_v25, %v1444_v38 }
 0x39f   : > { %v1804_v54 = vpop.f32.mrf.mxu1 }
 0x3a0   : > { %1471 = vst [vmem:[%s2881_s9 + $0x60] sm:$0xff] %v1445_v18  ;;  %v1456_v61 = vadd.f32 %v1804_v54, %v1694_v25 }
 0x3a1   : > { %v1447_v57 = vpop.f32.mrf.mxu1 }
 0x3a2   : > { %1474 = vst [vmem:[%s2881_s9 + $0x78] sm:$0xff] %v1456_v61  ;;  %v1448_v11 = vadd.f32 %v1694_v25, %v1447_v57 }
 0x3a4   : > { %1472 = vst [vmem:[%s2881_s9 + $0x68] sm:$0xff] %v1448_v11 }
 0x3a5   : > { %1951 = shalt.err (!%p1948_p3)
}
 0x3a6   : > { %s1952_s5 = scalar_lea.hbm %s2902_s14, 2048  ;;  %s1956_s30 = scalar_lea.hbm %s2954_s4, 4096 }
 0x3a7   : > { %p1953_p4 = scmp.ne.s32.totalorder %s2902_s14, %s1952_s5  ;;  %p1957_p9 = scmp.lt.s32.totalorder %s2902_s14, %s2954_s4 }
 0x3a8   : > { %p1958_p10 = scmp.lt.s32.totalorder %s1956_s30, %s1952_s5 }
 0x3a9   : > { %p1954_p7 = pnand %p1953_p4, %p2075_p5 }
 0x3aa   : > { %p1959_p11 = por %p1958_p10, %p1957_p9 }
 0x3ab   : > { %p1955_p8 = pneg %p1954_p7 }
 0x3ad   : > { %p1960_p12 = pnand %p1959_p11, %p1955_p8 }
 0x3af   : > { %1963 = shalt.err (!%p1960_p12)
}
 0x3b0   : > { %s2010_s8 = smov 128   ;;  %s2011_s9 = smov 8  }
 0x3b1   : > { %1805 = dma.vmem_to_hbm [thread:$0]  (%p2075_p5), %s2904_s11, 2048, %s2902_s14, %s2910_s19, %s2010_s8, %s2010_s8, %s2011_s9  }
 0x3b2 PF: > { %p1811_p13 = scmp.ge.s32.totalorder %s1998_s18, 2  ;;  %s1504_s10 = sand.u32 1, %s1986_s15  }
 0x3b3   : > { %s1505_s12 = scalar_lea.sflag [#allocation3], %s1504_s10 }
 0x3b4   : > { %p1808_p0 = pnand %p1811_p13, %p2079_p6 }
 0x3b6   : > { %p1809_p1 = pneg %p1808_p0 }
 0x3b8   : > { %1981 = dma.done.wait (%p1809_p1), %s1505_s12, 2048  }
 0x3b9   : > { %1983 = vsyncadd (%p1809_p1), %s1505_s12, 4294965248  ;;  %p14_p2 = scmp.ge.s32.totalorder %s2062_s21, 4   ;;  %s2991_s15 = smov %s1990_s16 }
 0x3ba   : > { %s2992_s16 = smov %s1994_s17  ;;  %s2993_s17 = smov %s2073_s24 }
 0x3bb   : > { %s2994_s18 = smov %s2062_s21  ;;  %16 = sbr.rel (!%p14_p2) target bundleno = 3 (0x3), region = 71 }
 0x3c0   :  { %1510 = vsyncpa [#allocation3], 1 }
 0x3c1   :  { %1512 = vsyncpa [#allocation3 + $0x1], 1 }

</bundles_post_ra>
